<compile_context>
chip_gen: v7x
topology: tpu7x:2x2x1
jax: 0.10.0
libtpu: 0.0.40
codegen_flags: <defaults>
</compile_context>

<pallas_src>
import functools

import jax
import jax.numpy as jnp
from jax.experimental import pallas as pl
from jax.experimental.pallas import tpu as pltpu

# ---------------- model hyper-parameters (synthetic, small) ----------------
D_MODEL = 32
D_INNER = 64
D_STATE = 16
DT_RANK = 4
D_CONV = 4
BIAS = False        # in_proj / out_proj bias (matches common Mamba config)
CONV_BIAS = True

BATCH = 2           # the kernel lane-packs exactly two batch rows
SEQ = 8


def _softplus(x):
    # matches torch.nn.functional.softplus(x) with beta=1, threshold=20
    return jnp.where(x > 20.0, x, jnp.log1p(jnp.exp(jnp.minimum(x, 20.0))))


def mamba_kernel(
    x_ref,        # (L, 2*d_model)                 packed input [b0 | b1]
    w_in_ref,     # (2*d_model, 4*d_inner)         [blkdiag(W_x) | blkdiag(W_res)]
    w_proj_ref,   # (2*d_inner, 2*d_inner + 4*n)   [blkdiag(W_delta) | blkdiag(W_B) | blkdiag(W_C)]
    w_out_ref,    # (2*d_inner, 2*d_model)         blkdiag(W_out)
    consts_ref,   # (n + d_conv + 3 + pad, 2*d_inner)  [-exp(A_log).T ; conv_w ; conv_b ; b_dt ; D]
    out_ref,      # (L, 2*d_model)
    *,
    seq,
    d_inner,
    d_state,
    d_conv,
):
    L = seq
    d_in = d_inner
    n = d_state
    d2 = 2 * d_in

    # ---- constants block: one DMA, static sublane views ----
    a_neg = consts_ref[0:n, :]                                   # (n, d2)
    conv_b = consts_ref[n + d_conv : n + d_conv + 1, :]          # (1, d2)
    b_dt = consts_ref[n + d_conv + 1 : n + d_conv + 2, :]        # (1, d2)
    d_skip = consts_ref[n + d_conv + 2 : n + d_conv + 3, :]      # (1, d2)

    # ---- fused in_proj: one (L, 2*d_model) @ (2*d_model, 4*d_inner) dot ----
    x = x_ref[...].astype(jnp.float32)                           # (L, 2*d_model)
    xz_res = jnp.dot(x, w_in_ref[...], preferred_element_type=jnp.float32)
    xz = xz_res[:, :d2]                                          # gate path, lane-packed
    res = xz_res[:, d2:]                                         # residual path, lane-packed

    # ---- depthwise causal conv1d: time = sublane axis (shared by both
    #      packed batches), so a plain row mask enforces causality ----
    pos = jax.lax.broadcasted_iota(jnp.int32, (L, d2), 0)
    conv = consts_ref[n + d_conv - 1 : n + d_conv, :] * xz       # zero-shift tap
    for k in range(d_conv - 1):                                  # static taps
        s = d_conv - 1 - k                                       # shift 3,2,1
        shifted = pltpu.roll(xz, s, 0)                           # row t <- xz[t-s] (wrap)
        shifted = jnp.where(pos >= s, shifted, 0.0)              # zero wrapped rows
        conv = conv + consts_ref[n + k : n + k + 1, :] * shifted
    conv = conv + conv_b
    u = conv * jax.nn.sigmoid(conv)                              # SiLU, (L, d2)

    # ---- fused delta / B / C projection (dt_proj folded into delta cols) ----
    proj = jnp.dot(u, w_proj_ref[...], preferred_element_type=jnp.float32)  # (L, d2 + 4n)
    delta = _softplus(proj[:, :d2] + b_dt)                       # (L, d2)
    bc = proj[:, d2:]                                            # (L, 4n): [B_b0 | B_b1 | C_b0 | C_b1]
    du = delta * u                                               # (L, d2)

    hi = jax.lax.broadcasted_iota(jnp.int32, (n, d2), 1) >= d_in  # lane-half selector, hoisted

    # ---- selective scan: lane-packed state (n, 2*d_inner); dA/dBu and the
    #      B/C broadcasts are built per step so nothing spills ----
    state = jnp.zeros((n, d2), jnp.float32)
    y_rows = []
    for i in range(L):                                           # static unroll over time
        dA_i = jnp.exp(delta[i : i + 1, :] * a_neg)              # (n, d2)
        cols = bc[i : i + 1, :][:, :, None][0]                   # (4n, 1) lane -> sublane
        bb = jnp.where(
            hi,
            jnp.broadcast_to(cols[n : 2 * n, :], (n, d2)),
            jnp.broadcast_to(cols[0:n, :], (n, d2)),
        )                                                        # per-half-lane B broadcast
        cb = jnp.where(
            hi,
            jnp.broadcast_to(cols[3 * n : 4 * n, :], (n, d2)),
            jnp.broadcast_to(cols[2 * n : 3 * n, :], (n, d2)),
        )                                                        # per-half-lane C broadcast
        state = dA_i * state + bb * du[i : i + 1, :]
        # VPU multiply + sublane (XLU) reduce instead of a tiny MXU dot
        y_rows.append(jnp.sum(cb * state, axis=0, keepdims=True))  # (1, d2)
    y = jnp.concatenate(y_rows, axis=0)                          # (L, d2)

    # ---- skip connection, gate, out_proj ----
    y = y + u * d_skip
    y = y * (res * jax.nn.sigmoid(res))
    out_ref[...] = jnp.dot(y, w_out_ref[...], preferred_element_type=jnp.float32).astype(
        out_ref.dtype
    )


@jax.jit
def mamba_block(x, w_in, conv_w, conv_b, w_x, w_dt, b_dt, a_log, d_vec, w_out):
    b, l, d_model = x.shape
    assert b == 2, "kernel lane-packs exactly two batch rows along d_inner"
    dt_rank, d_in = w_dt.shape
    n = a_log.shape[1]
    d_conv = conv_w.shape[0]
    d2 = 2 * d_in

    def blkdiag2(w):
        z = jnp.zeros_like(w)
        return jnp.block([[w, z], [z, w]])

    # One-time (model-load style) preprocessing, outside the kernel:
    #  * block-diagonal weights so both batch rows share full 128-lane vregs,
    #  * dt_proj folded into the delta columns of x_proj,
    #  * all small per-channel constants packed into one block -> 5 DMAs total.
    w_in_x, w_in_r = w_in[:, :d_in], w_in[:, d_in:]
    w_in_blk = jnp.concatenate([blkdiag2(w_in_x), blkdiag2(w_in_r)], axis=1)   # (2*d_model, 4*d_in)

    # TODO(synk): at production d_inner keep the low-rank dt factorization
    # (dense (d_in, d_in) fold is a VMEM/HBM liability, esp. on v7x's 64 MiB VMEM).
    w_delta = w_x[:, :dt_rank] @ w_dt                            # (d_in, d_in)
    w_b = w_x[:, dt_rank : dt_rank + n]                          # (d_in, n)
    w_c = w_x[:, dt_rank + n :]                                  # (d_in, n)
    w_proj_blk = jnp.concatenate(
        [blkdiag2(w_delta), blkdiag2(w_b), blkdiag2(w_c)], axis=1)             # (2*d_in, 2*d_in + 4n)

    w_out_blk = blkdiag2(w_out)                                                # (2*d_in, 2*d_model)

    consts_rows = n + d_conv + 3
    pad_rows = (-consts_rows) % 8
    consts = jnp.concatenate(
        [
            jnp.tile((-jnp.exp(a_log)).T, (1, 2)),               # rows [0, n)
            jnp.tile(conv_w, (1, 2)),                            # rows [n, n+d_conv)
            jnp.tile(conv_b, (1, 2)),                            # row n+d_conv
            jnp.tile(b_dt, (1, 2)),                              # row n+d_conv+1
            jnp.tile(d_vec, (1, 2)),                             # row n+d_conv+2
            jnp.zeros((pad_rows, d2), jnp.float32),
        ],
        axis=0,
    )                                                            # (24, 128)

    x_p = x.transpose(1, 0, 2).reshape(l, b * d_model)           # (L, 2*d_model), lane-packed

    def full_spec(shape):
        return pl.BlockSpec(shape, lambda i, _nd=len(shape): (0,) * _nd)

    grid_spec = pltpu.PrefetchScalarGridSpec(
        num_scalar_prefetch=0,
        grid=(1,),                                               # single step; whole problem in VMEM
        in_specs=[
            full_spec(x_p.shape),
            full_spec(w_in_blk.shape),
            full_spec(w_proj_blk.shape),
            full_spec(w_out_blk.shape),
            full_spec(consts.shape),
        ],
        out_specs=full_spec((l, b * d_model)),
        scratch_shapes=[],                                       # everything lives in registers
    )
    out_p = pl.pallas_call(
        functools.partial(mamba_kernel, seq=l, d_inner=d_in, d_state=n, d_conv=d_conv),
        out_shape=jax.ShapeDtypeStruct((l, b * d_model), jnp.float32),
        grid_spec=grid_spec,
        compiler_params=pltpu.CompilerParams(dimension_semantics=("arbitrary",)),
    )(x_p, w_in_blk, w_proj_blk, w_out_blk, consts)
    return out_p.reshape(l, b, d_model).transpose(1, 0, 2)


# ----------------------- pure-JAX reference (for check) -----------------------
def mamba_ref(x, w_in, conv_w, conv_b, w_x, w_dt, b_dt, a_log, d_vec, w_out):
    b, l, _ = x.shape
    x_and_res = x @ w_in
    xz, res = x_and_res[..., :D_INNER], x_and_res[..., D_INNER:]
    xp = jnp.pad(xz, ((0, 0), (D_CONV - 1, 0), (0, 0)))
    conv = jnp.zeros_like(xz)
    for k in range(D_CONV):
        conv = conv + conv_w[k][None, None, :] * xp[:, k : k + l, :]
    conv = conv + conv_b
    u = conv * jax.nn.sigmoid(conv)
    x_dbl = u @ w_x
    dt_raw = x_dbl[..., :DT_RANK]
    B = x_dbl[..., DT_RANK : DT_RANK + D_STATE]
    C = x_dbl[..., DT_RANK + D_STATE :]
    delta = _softplus(dt_raw @ w_dt + b_dt)
    A = -jnp.exp(a_log)                                          # (d_in, n)
    dA = jnp.exp(jnp.einsum("bld,dn->bldn", delta, A))
    dBu = jnp.einsum("bld,bln,bld->bldn", delta, B, u)
    s = jnp.zeros((b, D_INNER, D_STATE))
    ys = []
    for i in range(l):
        s = dA[:, i] * s + dBu[:, i]
        ys.append(jnp.einsum("bdn,bn->bd", s, C[:, i]))
    y = jnp.stack(ys, axis=1)
    y = y + u * d_vec
    y = y * (res * jax.nn.sigmoid(res))
    return y @ w_out


if __name__ == "__main__":
    key = jax.random.PRNGKey(0)
    ks = jax.random.split(key, 8)

    x = jax.random.normal(ks[0], (BATCH, SEQ, D_MODEL), jnp.float32)

    # Deterministic synthetic parameters (shapes follow MambaBlock.__init__).
    w_in = 0.05 * jax.random.normal(ks[1], (D_MODEL, 2 * D_INNER), jnp.float32)
    conv_w = 0.2 * jax.random.normal(ks[2], (D_CONV, D_INNER), jnp.float32)
    conv_b = (0.1 * jax.random.normal(ks[3], (1, D_INNER), jnp.float32)
              if CONV_BIAS else jnp.zeros((1, D_INNER), jnp.float32))
    w_x = 0.05 * jax.random.normal(ks[4], (D_INNER, DT_RANK + 2 * D_STATE), jnp.float32)
    w_dt = 0.1 * jax.random.normal(ks[5], (DT_RANK, D_INNER), jnp.float32)
    b_dt = 0.1 * jax.random.normal(ks[6], (1, D_INNER), jnp.float32)
    a_log = jnp.log(
        jnp.tile(jnp.arange(1, D_STATE + 1, dtype=jnp.float32)[None, :], (D_INNER, 1))
    )                                                            # (d_inner, d_state)
    d_vec = jnp.ones((1, D_INNER), jnp.float32)
    w_out = 0.05 * jax.random.normal(ks[7], (D_INNER, D_MODEL), jnp.float32)
    # BIAS = False -> no in_proj / out_proj biases.
    # TODO(synk): add in_proj / out_proj bias adds if bias=True is ever needed.

    out = mamba_block(x, w_in, conv_w, conv_b, w_x, w_dt, b_dt, a_log, d_vec, w_out)
    out = jax.block_until_ready(out)

    ref = mamba_ref(x, w_in, conv_w, conv_b, w_x, w_dt, b_dt, a_log, d_vec, w_out)
    assert out.shape == (BATCH, SEQ, D_MODEL)
    assert jnp.allclose(out, ref, rtol=1e-4, atol=1e-4), float(jnp.max(jnp.abs(out - ref)))

    print("KERNEL_OK")
</pallas_src>

<mosaic_0001>
module attributes {stable_mosaic.version = 11 : i64} {
  func.func @mamba_kernel(%arg0: i32, %arg1: memref<8x64xf32, #tpu.memory_space<vmem>>, %arg2: memref<64x256xf32, #tpu.memory_space<vmem>>, %arg3: memref<128x192xf32, #tpu.memory_space<vmem>>, %arg4: memref<128x64xf32, #tpu.memory_space<vmem>>, %arg5: memref<24x128xf32, #tpu.memory_space<vmem>>, %arg6: memref<8x64xf32, #tpu.memory_space<vmem>>) attributes {dimension_semantics = [#tpu.dimension_semantics<arbitrary>], iteration_bounds = array<i64: 1>, scalar_prefetch = 0 : i64, scratch_operands = 0 : i64, tpu.core_type = #tpu.core_type<tc>, window_params = [{pipeline_mode = #tpu.pipeline_mode<synchronous>, transform_indices = @transform_0, window_bounds = array<i64: 8, 64>}, {pipeline_mode = #tpu.pipeline_mode<synchronous>, transform_indices = @transform_1, window_bounds = array<i64: 64, 256>}, {pipeline_mode = #tpu.pipeline_mode<synchronous>, transform_indices = @transform_2, window_bounds = array<i64: 128, 192>}, {pipeline_mode = #tpu.pipeline_mode<synchronous>, transform_indices = @transform_3, window_bounds = array<i64: 128, 64>}, {pipeline_mode = #tpu.pipeline_mode<synchronous>, transform_indices = @transform_4, window_bounds = array<i64: 24, 128>}, {pipeline_mode = #tpu.pipeline_mode<synchronous>, transform_indices = @transform_5, window_bounds = array<i64: 8, 64>}]} {
    %c0 = arith.constant 0 : index
    %c0_0 = arith.constant 0 : index
    %0 = vector.load %arg5[%c0, %c0_0] : memref<24x128xf32, #tpu.memory_space<vmem>>, vector<16x128xf32>
    %c20 = arith.constant 20 : index
    %c0_1 = arith.constant 0 : index
    %1 = vector.load %arg5[%c20, %c0_1] : memref<24x128xf32, #tpu.memory_space<vmem>>, vector<1x128xf32>
    %c21 = arith.constant 21 : index
    %c0_2 = arith.constant 0 : index
    %2 = vector.load %arg5[%c21, %c0_2] : memref<24x128xf32, #tpu.memory_space<vmem>>, vector<1x128xf32>
    %c22 = arith.constant 22 : index
    %c0_3 = arith.constant 0 : index
    %3 = vector.load %arg5[%c22, %c0_3] : memref<24x128xf32, #tpu.memory_space<vmem>>, vector<1x128xf32>
    %c0_4 = arith.constant 0 : index
    %c0_5 = arith.constant 0 : index
    %4 = vector.load %arg1[%c0_4, %c0_5] : memref<8x64xf32, #tpu.memory_space<vmem>>, vector<8x64xf32>
    %c0_6 = arith.constant 0 : index
    %c0_7 = arith.constant 0 : index
    %5 = vector.load %arg2[%c0_6, %c0_7] : memref<64x256xf32, #tpu.memory_space<vmem>>, vector<64x256xf32>
    %cst = arith.constant dense<0.000000e+00> : vector<8x256xf32>
    %6 = tpu.matmul %4, %5, %cst {dimension_numbers = #tpu.dot_dimension_numbers<[1], [0], [0], [1], [0, 0, 1, 1], [], []>} : vector<8x64xf32>, vector<64x256xf32>, vector<8x256xf32> -> vector<8x256xf32>
    %7 = vector.extract_strided_slice %6 {offsets = [0, 0], sizes = [8, 128], strides = [1, 1]} : vector<8x256xf32> to vector<8x128xf32>
    %8 = vector.extract_strided_slice %6 {offsets = [0, 128], sizes = [8, 128], strides = [1, 1]} : vector<8x256xf32> to vector<8x128xf32>
    %9 = tpu.iota {dimensions = array<i32: 0>} : vector<8x128xi32>
    %c19 = arith.constant 19 : index
    %c0_8 = arith.constant 0 : index
    %10 = vector.load %arg5[%c19, %c0_8] : memref<24x128xf32, #tpu.memory_space<vmem>>, vector<1x128xf32>
    %11 = vector.broadcast %10 : vector<1x128xf32> to vector<8x128xf32>
    %12 = arith.mulf %11, %7 : vector<8x128xf32>
    %c3_i32 = arith.constant 3 : i32
    %13 = tpu.dynamic_rotate %7 by %c3_i32 dim 0 : vector<8x128xf32>, i32 -> vector<8x128xf32>
    %c3_i32_9 = arith.constant 3 : i32
    %14 = vector.broadcast %c3_i32_9 : i32 to vector<8x128xi32>
    %15 = arith.cmpi sge, %9, %14 : vector<8x128xi32>
    %cst_10 = arith.constant 0.000000e+00 : f32
    %16 = vector.broadcast %cst_10 : f32 to vector<8x128xf32>
    %17 = arith.select %15, %13, %16 : vector<8x128xi1>, vector<8x128xf32>
    %c16 = arith.constant 16 : index
    %c0_11 = arith.constant 0 : index
    %18 = vector.load %arg5[%c16, %c0_11] : memref<24x128xf32, #tpu.memory_space<vmem>>, vector<1x128xf32>
    %19 = vector.broadcast %18 : vector<1x128xf32> to vector<8x128xf32>
    %20 = arith.mulf %19, %17 : vector<8x128xf32>
    %21 = arith.addf %12, %20 : vector<8x128xf32>
    %c2_i32 = arith.constant 2 : i32
    %22 = tpu.dynamic_rotate %7 by %c2_i32 dim 0 : vector<8x128xf32>, i32 -> vector<8x128xf32>
    %c2_i32_12 = arith.constant 2 : i32
    %23 = vector.broadcast %c2_i32_12 : i32 to vector<8x128xi32>
    %24 = arith.cmpi sge, %9, %23 : vector<8x128xi32>
    %cst_13 = arith.constant 0.000000e+00 : f32
    %25 = vector.broadcast %cst_13 : f32 to vector<8x128xf32>
    %26 = arith.select %24, %22, %25 : vector<8x128xi1>, vector<8x128xf32>
    %c17 = arith.constant 17 : index
    %c0_14 = arith.constant 0 : index
    %27 = vector.load %arg5[%c17, %c0_14] : memref<24x128xf32, #tpu.memory_space<vmem>>, vector<1x128xf32>
    %28 = vector.broadcast %27 : vector<1x128xf32> to vector<8x128xf32>
    %29 = arith.mulf %28, %26 : vector<8x128xf32>
    %30 = arith.addf %21, %29 : vector<8x128xf32>
    %c1_i32 = arith.constant 1 : i32
    %31 = tpu.dynamic_rotate %7 by %c1_i32 dim 0 : vector<8x128xf32>, i32 -> vector<8x128xf32>
    %c1_i32_15 = arith.constant 1 : i32
    %32 = vector.broadcast %c1_i32_15 : i32 to vector<8x128xi32>
    %33 = arith.cmpi sge, %9, %32 : vector<8x128xi32>
    %cst_16 = arith.constant 0.000000e+00 : f32
    %34 = vector.broadcast %cst_16 : f32 to vector<8x128xf32>
    %35 = arith.select %33, %31, %34 : vector<8x128xi1>, vector<8x128xf32>
    %c18 = arith.constant 18 : index
    %c0_17 = arith.constant 0 : index
    %36 = vector.load %arg5[%c18, %c0_17] : memref<24x128xf32, #tpu.memory_space<vmem>>, vector<1x128xf32>
    %37 = vector.broadcast %36 : vector<1x128xf32> to vector<8x128xf32>
    %38 = arith.mulf %37, %35 : vector<8x128xf32>
    %39 = arith.addf %30, %38 : vector<8x128xf32>
    %40 = vector.broadcast %1 : vector<1x128xf32> to vector<8x128xf32>
    %41 = arith.addf %39, %40 : vector<8x128xf32>
    %42 = arith.negf %41 : vector<8x128xf32>
    %43 = math.exp %42 : vector<8x128xf32>
    %cst_18 = arith.constant 1.000000e+00 : f32
    %44 = vector.broadcast %cst_18 : f32 to vector<8x128xf32>
    %45 = arith.addf %44, %43 : vector<8x128xf32>
    %46 = arith.divf %44, %45 : vector<8x128xf32>
    %47 = arith.mulf %41, %46 : vector<8x128xf32>
    %c0_19 = arith.constant 0 : index
    %c0_20 = arith.constant 0 : index
    %48 = vector.load %arg3[%c0_19, %c0_20] : memref<128x192xf32, #tpu.memory_space<vmem>>, vector<128x192xf32>
    %cst_21 = arith.constant dense<0.000000e+00> : vector<8x192xf32>
    %49 = tpu.matmul %47, %48, %cst_21 {dimension_numbers = #tpu.dot_dimension_numbers<[1], [0], [0], [1], [0, 0, 1, 1], [], []>} : vector<8x128xf32>, vector<128x192xf32>, vector<8x192xf32> -> vector<8x192xf32>
    %50 = vector.extract_strided_slice %49 {offsets = [0, 0], sizes = [8, 128], strides = [1, 1]} : vector<8x192xf32> to vector<8x128xf32>
    %51 = vector.broadcast %2 : vector<1x128xf32> to vector<8x128xf32>
    %52 = arith.addf %50, %51 : vector<8x128xf32>
    %cst_22 = arith.constant 2.000000e+01 : f32
    %53 = vector.broadcast %cst_22 : f32 to vector<8x128xf32>
    %54 = arith.cmpf ogt, %52, %53 : vector<8x128xf32>
    %cst_23 = arith.constant 2.000000e+01 : f32
    %55 = vector.broadcast %cst_23 : f32 to vector<8x128xf32>
    %56 = arith.minimumf %52, %55 : vector<8x128xf32>
    %57 = math.exp %56 : vector<8x128xf32>
    %58 = math.log1p %57 : vector<8x128xf32>
    %59 = arith.select %54, %52, %58 : vector<8x128xi1>, vector<8x128xf32>
    %60 = vector.extract_strided_slice %49 {offsets = [0, 128], sizes = [8, 64], strides = [1, 1]} : vector<8x192xf32> to vector<8x64xf32>
    %61 = arith.mulf %59, %47 : vector<8x128xf32>
    %62 = tpu.iota {dimensions = array<i32: 1>} : vector<16x128xi32>
    %c64_i32 = arith.constant 64 : i32
    %63 = vector.broadcast %c64_i32 : i32 to vector<16x128xi32>
    %64 = arith.cmpi sge, %62, %63 : vector<16x128xi32>
    %cst_24 = arith.constant 0.000000e+00 : f32
    %65 = vector.broadcast %cst_24 : f32 to vector<16x128xf32>
    %66 = vector.extract_strided_slice %59 {offsets = [0, 0], sizes = [1, 128], strides = [1, 1]} : vector<8x128xf32> to vector<1x128xf32>
    %67 = vector.broadcast %66 : vector<1x128xf32> to vector<16x128xf32>
    %68 = arith.mulf %67, %0 : vector<16x128xf32>
    %69 = math.exp %68 : vector<16x128xf32>
    %70 = vector.extract_strided_slice %60 {offsets = [0, 0], sizes = [1, 64], strides = [1, 1]} : vector<8x64xf32> to vector<1x64xf32>
    %71 = vector.shape_cast %70 : vector<1x64xf32> to vector<1x64x1xf32>
    %72 = vector.shape_cast %71 : vector<1x64x1xf32> to vector<64x1xf32>
    %73 = vector.extract_strided_slice %72 {offsets = [16, 0], sizes = [16, 1], strides = [1, 1]} : vector<64x1xf32> to vector<16x1xf32>
    %74 = vector.shape_cast %73 : vector<16x1xf32> to vector<16x1xf32>
    %75 = vector.broadcast %74 : vector<16x1xf32> to vector<16x128xf32>
    %76 = vector.extract_strided_slice %72 {offsets = [0, 0], sizes = [16, 1], strides = [1, 1]} : vector<64x1xf32> to vector<16x1xf32>
    %77 = vector.shape_cast %76 : vector<16x1xf32> to vector<16x1xf32>
    %78 = vector.broadcast %77 : vector<16x1xf32> to vector<16x128xf32>
    %79 = arith.select %64, %75, %78 : vector<16x128xi1>, vector<16x128xf32>
    %80 = vector.extract_strided_slice %72 {offsets = [48, 0], sizes = [16, 1], strides = [1, 1]} : vector<64x1xf32> to vector<16x1xf32>
    %81 = vector.shape_cast %80 : vector<16x1xf32> to vector<16x1xf32>
    %82 = vector.broadcast %81 : vector<16x1xf32> to vector<16x128xf32>
    %83 = vector.extract_strided_slice %72 {offsets = [32, 0], sizes = [16, 1], strides = [1, 1]} : vector<64x1xf32> to vector<16x1xf32>
    %84 = vector.shape_cast %83 : vector<16x1xf32> to vector<16x1xf32>
    %85 = vector.broadcast %84 : vector<16x1xf32> to vector<16x128xf32>
    %86 = arith.select %64, %82, %85 : vector<16x128xi1>, vector<16x128xf32>
    %87 = arith.mulf %69, %65 : vector<16x128xf32>
    %88 = vector.extract_strided_slice %61 {offsets = [0, 0], sizes = [1, 128], strides = [1, 1]} : vector<8x128xf32> to vector<1x128xf32>
    %89 = vector.broadcast %88 : vector<1x128xf32> to vector<16x128xf32>
    %90 = arith.mulf %79, %89 : vector<16x128xf32>
    %91 = arith.addf %87, %90 : vector<16x128xf32>
    %92 = arith.mulf %86, %91 : vector<16x128xf32>
    %cst_25 = arith.constant dense<0.000000e+00> : vector<128xf32>
    %93 = vector.multi_reduction <add>, %92, %cst_25 [0] : vector<16x128xf32> to vector<128xf32>
    %94 = vector.shape_cast %93 : vector<128xf32> to vector<1x128xf32>
    %95 = vector.extract_strided_slice %59 {offsets = [1, 0], sizes = [1, 128], strides = [1, 1]} : vector<8x128xf32> to vector<1x128xf32>
    %96 = vector.broadcast %95 : vector<1x128xf32> to vector<16x128xf32>
    %97 = arith.mulf %96, %0 : vector<16x128xf32>
    %98 = math.exp %97 : vector<16x128xf32>
    %99 = vector.extract_strided_slice %60 {offsets = [1, 0], sizes = [1, 64], strides = [1, 1]} : vector<8x64xf32> to vector<1x64xf32>
    %100 = vector.shape_cast %99 : vector<1x64xf32> to vector<1x64x1xf32>
    %101 = vector.shape_cast %100 : vector<1x64x1xf32> to vector<64x1xf32>
    %102 = vector.extract_strided_slice %101 {offsets = [16, 0], sizes = [16, 1], strides = [1, 1]} : vector<64x1xf32> to vector<16x1xf32>
    %103 = vector.shape_cast %102 : vector<16x1xf32> to vector<16x1xf32>
    %104 = vector.broadcast %103 : vector<16x1xf32> to vector<16x128xf32>
    %105 = vector.extract_strided_slice %101 {offsets = [0, 0], sizes = [16, 1], strides = [1, 1]} : vector<64x1xf32> to vector<16x1xf32>
    %106 = vector.shape_cast %105 : vector<16x1xf32> to vector<16x1xf32>
    %107 = vector.broadcast %106 : vector<16x1xf32> to vector<16x128xf32>
    %108 = arith.select %64, %104, %107 : vector<16x128xi1>, vector<16x128xf32>
    %109 = vector.extract_strided_slice %101 {offsets = [48, 0], sizes = [16, 1], strides = [1, 1]} : vector<64x1xf32> to vector<16x1xf32>
    %110 = vector.shape_cast %109 : vector<16x1xf32> to vector<16x1xf32>
    %111 = vector.broadcast %110 : vector<16x1xf32> to vector<16x128xf32>
    %112 = vector.extract_strided_slice %101 {offsets = [32, 0], sizes = [16, 1], strides = [1, 1]} : vector<64x1xf32> to vector<16x1xf32>
    %113 = vector.shape_cast %112 : vector<16x1xf32> to vector<16x1xf32>
    %114 = vector.broadcast %113 : vector<16x1xf32> to vector<16x128xf32>
    %115 = arith.select %64, %111, %114 : vector<16x128xi1>, vector<16x128xf32>
    %116 = arith.mulf %98, %91 : vector<16x128xf32>
    %117 = vector.extract_strided_slice %61 {offsets = [1, 0], sizes = [1, 128], strides = [1, 1]} : vector<8x128xf32> to vector<1x128xf32>
    %118 = vector.broadcast %117 : vector<1x128xf32> to vector<16x128xf32>
    %119 = arith.mulf %108, %118 : vector<16x128xf32>
    %120 = arith.addf %116, %119 : vector<16x128xf32>
    %121 = arith.mulf %115, %120 : vector<16x128xf32>
    %cst_26 = arith.constant dense<0.000000e+00> : vector<128xf32>
    %122 = vector.multi_reduction <add>, %121, %cst_26 [0] : vector<16x128xf32> to vector<128xf32>
    %123 = vector.shape_cast %122 : vector<128xf32> to vector<1x128xf32>
    %124 = vector.extract_strided_slice %59 {offsets = [2, 0], sizes = [1, 128], strides = [1, 1]} : vector<8x128xf32> to vector<1x128xf32>
    %125 = vector.broadcast %124 : vector<1x128xf32> to vector<16x128xf32>
    %126 = arith.mulf %125, %0 : vector<16x128xf32>
    %127 = math.exp %126 : vector<16x128xf32>
    %128 = vector.extract_strided_slice %60 {offsets = [2, 0], sizes = [1, 64], strides = [1, 1]} : vector<8x64xf32> to vector<1x64xf32>
    %129 = vector.shape_cast %128 : vector<1x64xf32> to vector<1x64x1xf32>
    %130 = vector.shape_cast %129 : vector<1x64x1xf32> to vector<64x1xf32>
    %131 = vector.extract_strided_slice %130 {offsets = [16, 0], sizes = [16, 1], strides = [1, 1]} : vector<64x1xf32> to vector<16x1xf32>
    %132 = vector.shape_cast %131 : vector<16x1xf32> to vector<16x1xf32>
    %133 = vector.broadcast %132 : vector<16x1xf32> to vector<16x128xf32>
    %134 = vector.extract_strided_slice %130 {offsets = [0, 0], sizes = [16, 1], strides = [1, 1]} : vector<64x1xf32> to vector<16x1xf32>
    %135 = vector.shape_cast %134 : vector<16x1xf32> to vector<16x1xf32>
    %136 = vector.broadcast %135 : vector<16x1xf32> to vector<16x128xf32>
    %137 = arith.select %64, %133, %136 : vector<16x128xi1>, vector<16x128xf32>
    %138 = vector.extract_strided_slice %130 {offsets = [48, 0], sizes = [16, 1], strides = [1, 1]} : vector<64x1xf32> to vector<16x1xf32>
    %139 = vector.shape_cast %138 : vector<16x1xf32> to vector<16x1xf32>
    %140 = vector.broadcast %139 : vector<16x1xf32> to vector<16x128xf32>
    %141 = vector.extract_strided_slice %130 {offsets = [32, 0], sizes = [16, 1], strides = [1, 1]} : vector<64x1xf32> to vector<16x1xf32>
    %142 = vector.shape_cast %141 : vector<16x1xf32> to vector<16x1xf32>
    %143 = vector.broadcast %142 : vector<16x1xf32> to vector<16x128xf32>
    %144 = arith.select %64, %140, %143 : vector<16x128xi1>, vector<16x128xf32>
    %145 = arith.mulf %127, %120 : vector<16x128xf32>
    %146 = vector.extract_strided_slice %61 {offsets = [2, 0], sizes = [1, 128], strides = [1, 1]} : vector<8x128xf32> to vector<1x128xf32>
    %147 = vector.broadcast %146 : vector<1x128xf32> to vector<16x128xf32>
    %148 = arith.mulf %137, %147 : vector<16x128xf32>
    %149 = arith.addf %145, %148 : vector<16x128xf32>
    %150 = arith.mulf %144, %149 : vector<16x128xf32>
    %cst_27 = arith.constant dense<0.000000e+00> : vector<128xf32>
    %151 = vector.multi_reduction <add>, %150, %cst_27 [0] : vector<16x128xf32> to vector<128xf32>
    %152 = vector.shape_cast %151 : vector<128xf32> to vector<1x128xf32>
    %153 = vector.extract_strided_slice %59 {offsets = [3, 0], sizes = [1, 128], strides = [1, 1]} : vector<8x128xf32> to vector<1x128xf32>
    %154 = vector.broadcast %153 : vector<1x128xf32> to vector<16x128xf32>
    %155 = arith.mulf %154, %0 : vector<16x128xf32>
    %156 = math.exp %155 : vector<16x128xf32>
    %157 = vector.extract_strided_slice %60 {offsets = [3, 0], sizes = [1, 64], strides = [1, 1]} : vector<8x64xf32> to vector<1x64xf32>
    %158 = vector.shape_cast %157 : vector<1x64xf32> to vector<1x64x1xf32>
    %159 = vector.shape_cast %158 : vector<1x64x1xf32> to vector<64x1xf32>
    %160 = vector.extract_strided_slice %159 {offsets = [16, 0], sizes = [16, 1], strides = [1, 1]} : vector<64x1xf32> to vector<16x1xf32>
    %161 = vector.shape_cast %160 : vector<16x1xf32> to vector<16x1xf32>
    %162 = vector.broadcast %161 : vector<16x1xf32> to vector<16x128xf32>
    %163 = vector.extract_strided_slice %159 {offsets = [0, 0], sizes = [16, 1], strides = [1, 1]} : vector<64x1xf32> to vector<16x1xf32>
    %164 = vector.shape_cast %163 : vector<16x1xf32> to vector<16x1xf32>
    %165 = vector.broadcast %164 : vector<16x1xf32> to vector<16x128xf32>
    %166 = arith.select %64, %162, %165 : vector<16x128xi1>, vector<16x128xf32>
    %167 = vector.extract_strided_slice %159 {offsets = [48, 0], sizes = [16, 1], strides = [1, 1]} : vector<64x1xf32> to vector<16x1xf32>
    %168 = vector.shape_cast %167 : vector<16x1xf32> to vector<16x1xf32>
    %169 = vector.broadcast %168 : vector<16x1xf32> to vector<16x128xf32>
    %170 = vector.extract_strided_slice %159 {offsets = [32, 0], sizes = [16, 1], strides = [1, 1]} : vector<64x1xf32> to vector<16x1xf32>
    %171 = vector.shape_cast %170 : vector<16x1xf32> to vector<16x1xf32>
    %172 = vector.broadcast %171 : vector<16x1xf32> to vector<16x128xf32>
    %173 = arith.select %64, %169, %172 : vector<16x128xi1>, vector<16x128xf32>
    %174 = arith.mulf %156, %149 : vector<16x128xf32>
    %175 = vector.extract_strided_slice %61 {offsets = [3, 0], sizes = [1, 128], strides = [1, 1]} : vector<8x128xf32> to vector<1x128xf32>
    %176 = vector.broadcast %175 : vector<1x128xf32> to vector<16x128xf32>
    %177 = arith.mulf %166, %176 : vector<16x128xf32>
    %178 = arith.addf %174, %177 : vector<16x128xf32>
    %179 = arith.mulf %173, %178 : vector<16x128xf32>
    %cst_28 = arith.constant dense<0.000000e+00> : vector<128xf32>
    %180 = vector.multi_reduction <add>, %179, %cst_28 [0] : vector<16x128xf32> to vector<128xf32>
    %181 = vector.shape_cast %180 : vector<128xf32> to vector<1x128xf32>
    %182 = vector.extract_strided_slice %59 {offsets = [4, 0], sizes = [1, 128], strides = [1, 1]} : vector<8x128xf32> to vector<1x128xf32>
    %183 = vector.broadcast %182 : vector<1x128xf32> to vector<16x128xf32>
    %184 = arith.mulf %183, %0 : vector<16x128xf32>
    %185 = math.exp %184 : vector<16x128xf32>
    %186 = vector.extract_strided_slice %60 {offsets = [4, 0], sizes = [1, 64], strides = [1, 1]} : vector<8x64xf32> to vector<1x64xf32>
    %187 = vector.shape_cast %186 : vector<1x64xf32> to vector<1x64x1xf32>
    %188 = vector.shape_cast %187 : vector<1x64x1xf32> to vector<64x1xf32>
    %189 = vector.extract_strided_slice %188 {offsets = [16, 0], sizes = [16, 1], strides = [1, 1]} : vector<64x1xf32> to vector<16x1xf32>
    %190 = vector.shape_cast %189 : vector<16x1xf32> to vector<16x1xf32>
    %191 = vector.broadcast %190 : vector<16x1xf32> to vector<16x128xf32>
    %192 = vector.extract_strided_slice %188 {offsets = [0, 0], sizes = [16, 1], strides = [1, 1]} : vector<64x1xf32> to vector<16x1xf32>
    %193 = vector.shape_cast %192 : vector<16x1xf32> to vector<16x1xf32>
    %194 = vector.broadcast %193 : vector<16x1xf32> to vector<16x128xf32>
    %195 = arith.select %64, %191, %194 : vector<16x128xi1>, vector<16x128xf32>
    %196 = vector.extract_strided_slice %188 {offsets = [48, 0], sizes = [16, 1], strides = [1, 1]} : vector<64x1xf32> to vector<16x1xf32>
    %197 = vector.shape_cast %196 : vector<16x1xf32> to vector<16x1xf32>
    %198 = vector.broadcast %197 : vector<16x1xf32> to vector<16x128xf32>
    %199 = vector.extract_strided_slice %188 {offsets = [32, 0], sizes = [16, 1], strides = [1, 1]} : vector<64x1xf32> to vector<16x1xf32>
    %200 = vector.shape_cast %199 : vector<16x1xf32> to vector<16x1xf32>
    %201 = vector.broadcast %200 : vector<16x1xf32> to vector<16x128xf32>
    %202 = arith.select %64, %198, %201 : vector<16x128xi1>, vector<16x128xf32>
    %203 = arith.mulf %185, %178 : vector<16x128xf32>
    %204 = vector.extract_strided_slice %61 {offsets = [4, 0], sizes = [1, 128], strides = [1, 1]} : vector<8x128xf32> to vector<1x128xf32>
    %205 = vector.broadcast %204 : vector<1x128xf32> to vector<16x128xf32>
    %206 = arith.mulf %195, %205 : vector<16x128xf32>
    %207 = arith.addf %203, %206 : vector<16x128xf32>
    %208 = arith.mulf %202, %207 : vector<16x128xf32>
    %cst_29 = arith.constant dense<0.000000e+00> : vector<128xf32>
    %209 = vector.multi_reduction <add>, %208, %cst_29 [0] : vector<16x128xf32> to vector<128xf32>
    %210 = vector.shape_cast %209 : vector<128xf32> to vector<1x128xf32>
    %211 = vector.extract_strided_slice %59 {offsets = [5, 0], sizes = [1, 128], strides = [1, 1]} : vector<8x128xf32> to vector<1x128xf32>
    %212 = vector.broadcast %211 : vector<1x128xf32> to vector<16x128xf32>
    %213 = arith.mulf %212, %0 : vector<16x128xf32>
    %214 = math.exp %213 : vector<16x128xf32>
    %215 = vector.extract_strided_slice %60 {offsets = [5, 0], sizes = [1, 64], strides = [1, 1]} : vector<8x64xf32> to vector<1x64xf32>
    %216 = vector.shape_cast %215 : vector<1x64xf32> to vector<1x64x1xf32>
    %217 = vector.shape_cast %216 : vector<1x64x1xf32> to vector<64x1xf32>
    %218 = vector.extract_strided_slice %217 {offsets = [16, 0], sizes = [16, 1], strides = [1, 1]} : vector<64x1xf32> to vector<16x1xf32>
    %219 = vector.shape_cast %218 : vector<16x1xf32> to vector<16x1xf32>
    %220 = vector.broadcast %219 : vector<16x1xf32> to vector<16x128xf32>
    %221 = vector.extract_strided_slice %217 {offsets = [0, 0], sizes = [16, 1], strides = [1, 1]} : vector<64x1xf32> to vector<16x1xf32>
    %222 = vector.shape_cast %221 : vector<16x1xf32> to vector<16x1xf32>
    %223 = vector.broadcast %222 : vector<16x1xf32> to vector<16x128xf32>
    %224 = arith.select %64, %220, %223 : vector<16x128xi1>, vector<16x128xf32>
    %225 = vector.extract_strided_slice %217 {offsets = [48, 0], sizes = [16, 1], strides = [1, 1]} : vector<64x1xf32> to vector<16x1xf32>
    %226 = vector.shape_cast %225 : vector<16x1xf32> to vector<16x1xf32>
    %227 = vector.broadcast %226 : vector<16x1xf32> to vector<16x128xf32>
    %228 = vector.extract_strided_slice %217 {offsets = [32, 0], sizes = [16, 1], strides = [1, 1]} : vector<64x1xf32> to vector<16x1xf32>
    %229 = vector.shape_cast %228 : vector<16x1xf32> to vector<16x1xf32>
    %230 = vector.broadcast %229 : vector<16x1xf32> to vector<16x128xf32>
    %231 = arith.select %64, %227, %230 : vector<16x128xi1>, vector<16x128xf32>
    %232 = arith.mulf %214, %207 : vector<16x128xf32>
    %233 = vector.extract_strided_slice %61 {offsets = [5, 0], sizes = [1, 128], strides = [1, 1]} : vector<8x128xf32> to vector<1x128xf32>
    %234 = vector.broadcast %233 : vector<1x128xf32> to vector<16x128xf32>
    %235 = arith.mulf %224, %234 : vector<16x128xf32>
    %236 = arith.addf %232, %235 : vector<16x128xf32>
    %237 = arith.mulf %231, %236 : vector<16x128xf32>
    %cst_30 = arith.constant dense<0.000000e+00> : vector<128xf32>
    %238 = vector.multi_reduction <add>, %237, %cst_30 [0] : vector<16x128xf32> to vector<128xf32>
    %239 = vector.shape_cast %238 : vector<128xf32> to vector<1x128xf32>
    %240 = vector.extract_strided_slice %59 {offsets = [6, 0], sizes = [1, 128], strides = [1, 1]} : vector<8x128xf32> to vector<1x128xf32>
    %241 = vector.broadcast %240 : vector<1x128xf32> to vector<16x128xf32>
    %242 = arith.mulf %241, %0 : vector<16x128xf32>
    %243 = math.exp %242 : vector<16x128xf32>
    %244 = vector.extract_strided_slice %60 {offsets = [6, 0], sizes = [1, 64], strides = [1, 1]} : vector<8x64xf32> to vector<1x64xf32>
    %245 = vector.shape_cast %244 : vector<1x64xf32> to vector<1x64x1xf32>
    %246 = vector.shape_cast %245 : vector<1x64x1xf32> to vector<64x1xf32>
    %247 = vector.extract_strided_slice %246 {offsets = [16, 0], sizes = [16, 1], strides = [1, 1]} : vector<64x1xf32> to vector<16x1xf32>
    %248 = vector.shape_cast %247 : vector<16x1xf32> to vector<16x1xf32>
    %249 = vector.broadcast %248 : vector<16x1xf32> to vector<16x128xf32>
    %250 = vector.extract_strided_slice %246 {offsets = [0, 0], sizes = [16, 1], strides = [1, 1]} : vector<64x1xf32> to vector<16x1xf32>
    %251 = vector.shape_cast %250 : vector<16x1xf32> to vector<16x1xf32>
    %252 = vector.broadcast %251 : vector<16x1xf32> to vector<16x128xf32>
    %253 = arith.select %64, %249, %252 : vector<16x128xi1>, vector<16x128xf32>
    %254 = vector.extract_strided_slice %246 {offsets = [48, 0], sizes = [16, 1], strides = [1, 1]} : vector<64x1xf32> to vector<16x1xf32>
    %255 = vector.shape_cast %254 : vector<16x1xf32> to vector<16x1xf32>
    %256 = vector.broadcast %255 : vector<16x1xf32> to vector<16x128xf32>
    %257 = vector.extract_strided_slice %246 {offsets = [32, 0], sizes = [16, 1], strides = [1, 1]} : vector<64x1xf32> to vector<16x1xf32>
    %258 = vector.shape_cast %257 : vector<16x1xf32> to vector<16x1xf32>
    %259 = vector.broadcast %258 : vector<16x1xf32> to vector<16x128xf32>
    %260 = arith.select %64, %256, %259 : vector<16x128xi1>, vector<16x128xf32>
    %261 = arith.mulf %243, %236 : vector<16x128xf32>
    %262 = vector.extract_strided_slice %61 {offsets = [6, 0], sizes = [1, 128], strides = [1, 1]} : vector<8x128xf32> to vector<1x128xf32>
    %263 = vector.broadcast %262 : vector<1x128xf32> to vector<16x128xf32>
    %264 = arith.mulf %253, %263 : vector<16x128xf32>
    %265 = arith.addf %261, %264 : vector<16x128xf32>
    %266 = arith.mulf %260, %265 : vector<16x128xf32>
    %cst_31 = arith.constant dense<0.000000e+00> : vector<128xf32>
    %267 = vector.multi_reduction <add>, %266, %cst_31 [0] : vector<16x128xf32> to vector<128xf32>
    %268 = vector.shape_cast %267 : vector<128xf32> to vector<1x128xf32>
    %269 = vector.extract_strided_slice %59 {offsets = [7, 0], sizes = [1, 128], strides = [1, 1]} : vector<8x128xf32> to vector<1x128xf32>
    %270 = vector.broadcast %269 : vector<1x128xf32> to vector<16x128xf32>
    %271 = arith.mulf %270, %0 : vector<16x128xf32>
    %272 = math.exp %271 : vector<16x128xf32>
    %273 = vector.extract_strided_slice %60 {offsets = [7, 0], sizes = [1, 64], strides = [1, 1]} : vector<8x64xf32> to vector<1x64xf32>
    %274 = vector.shape_cast %273 : vector<1x64xf32> to vector<1x64x1xf32>
    %275 = vector.shape_cast %274 : vector<1x64x1xf32> to vector<64x1xf32>
    %276 = vector.extract_strided_slice %275 {offsets = [16, 0], sizes = [16, 1], strides = [1, 1]} : vector<64x1xf32> to vector<16x1xf32>
    %277 = vector.shape_cast %276 : vector<16x1xf32> to vector<16x1xf32>
    %278 = vector.broadcast %277 : vector<16x1xf32> to vector<16x128xf32>
    %279 = vector.extract_strided_slice %275 {offsets = [0, 0], sizes = [16, 1], strides = [1, 1]} : vector<64x1xf32> to vector<16x1xf32>
    %280 = vector.shape_cast %279 : vector<16x1xf32> to vector<16x1xf32>
    %281 = vector.broadcast %280 : vector<16x1xf32> to vector<16x128xf32>
    %282 = arith.select %64, %278, %281 : vector<16x128xi1>, vector<16x128xf32>
    %283 = vector.extract_strided_slice %275 {offsets = [48, 0], sizes = [16, 1], strides = [1, 1]} : vector<64x1xf32> to vector<16x1xf32>
    %284 = vector.shape_cast %283 : vector<16x1xf32> to vector<16x1xf32>
    %285 = vector.broadcast %284 : vector<16x1xf32> to vector<16x128xf32>
    %286 = vector.extract_strided_slice %275 {offsets = [32, 0], sizes = [16, 1], strides = [1, 1]} : vector<64x1xf32> to vector<16x1xf32>
    %287 = vector.shape_cast %286 : vector<16x1xf32> to vector<16x1xf32>
    %288 = vector.broadcast %287 : vector<16x1xf32> to vector<16x128xf32>
    %289 = arith.select %64, %285, %288 : vector<16x128xi1>, vector<16x128xf32>
    %290 = arith.mulf %272, %265 : vector<16x128xf32>
    %291 = vector.extract_strided_slice %61 {offsets = [7, 0], sizes = [1, 128], strides = [1, 1]} : vector<8x128xf32> to vector<1x128xf32>
    %292 = vector.broadcast %291 : vector<1x128xf32> to vector<16x128xf32>
    %293 = arith.mulf %282, %292 : vector<16x128xf32>
    %294 = arith.addf %290, %293 : vector<16x128xf32>
    %295 = arith.mulf %289, %294 : vector<16x128xf32>
    %cst_32 = arith.constant dense<0.000000e+00> : vector<128xf32>
    %296 = vector.multi_reduction <add>, %295, %cst_32 [0] : vector<16x128xf32> to vector<128xf32>
    %297 = vector.shape_cast %296 : vector<128xf32> to vector<1x128xf32>
    %298 = tpu.concatenate %94, %123, %152, %181, %210, %239, %268, %297 in 0 : vector<1x128xf32>, vector<1x128xf32>, vector<1x128xf32>, vector<1x128xf32>, vector<1x128xf32>, vector<1x128xf32>, vector<1x128xf32>, vector<1x128xf32> -> vector<8x128xf32>
    %299 = vector.broadcast %3 : vector<1x128xf32> to vector<8x128xf32>
    %300 = arith.mulf %47, %299 : vector<8x128xf32>
    %301 = arith.addf %298, %300 : vector<8x128xf32>
    %302 = arith.negf %8 : vector<8x128xf32>
    %303 = math.exp %302 : vector<8x128xf32>
    %cst_33 = arith.constant 1.000000e+00 : f32
    %304 = vector.broadcast %cst_33 : f32 to vector<8x128xf32>
    %305 = arith.addf %304, %303 : vector<8x128xf32>
    %306 = arith.divf %304, %305 : vector<8x128xf32>
    %307 = arith.mulf %8, %306 : vector<8x128xf32>
    %308 = arith.mulf %301, %307 : vector<8x128xf32>
    %c0_34 = arith.constant 0 : index
    %c0_35 = arith.constant 0 : index
    %309 = vector.load %arg4[%c0_34, %c0_35] : memref<128x64xf32, #tpu.memory_space<vmem>>, vector<128x64xf32>
    %cst_36 = arith.constant dense<0.000000e+00> : vector<8x64xf32>
    %310 = tpu.matmul %308, %309, %cst_36 {dimension_numbers = #tpu.dot_dimension_numbers<[1], [0], [0], [1], [0, 0, 1, 1], [], []>} : vector<8x128xf32>, vector<128x64xf32>, vector<8x64xf32> -> vector<8x64xf32>
    %c0_37 = arith.constant 0 : index
    %c0_38 = arith.constant 0 : index
    %311 = vector.load %arg6[%c0_37, %c0_38] : memref<8x64xf32, #tpu.memory_space<vmem>>, vector<8x64xf32>
    tpu.vector_store %arg6[%c0_37, %c0_38], %310 {strides = array<i32>} : memref<8x64xf32, #tpu.memory_space<vmem>>, vector<8x64xf32>,
    return
  }
  func.func @transform_0(%arg0: i32) -> (i32, i32) {
    %c0_i32 = arith.constant 0 : i32
    %c0_i32_0 = arith.constant 0 : i32
    %c0_i32_1 = arith.constant 0 : i32
    return %c0_i32, %c0_i32_0 : i32, i32
  }
  func.func @transform_1(%arg0: i32) -> (i32, i32) {
    %c0_i32 = arith.constant 0 : i32
    %c0_i32_0 = arith.constant 0 : i32
    %c0_i32_1 = arith.constant 0 : i32
    return %c0_i32, %c0_i32_0 : i32, i32
  }
  func.func @transform_2(%arg0: i32) -> (i32, i32) {
    %c0_i32 = arith.constant 0 : i32
    %c0_i32_0 = arith.constant 0 : i32
    %c0_i32_1 = arith.constant 0 : i32
    return %c0_i32, %c0_i32_0 : i32, i32
  }
  func.func @transform_3(%arg0: i32) -> (i32, i32) {
    %c0_i32 = arith.constant 0 : i32
    %c0_i32_0 = arith.constant 0 : i32
    %c0_i32_1 = arith.constant 0 : i32
    return %c0_i32, %c0_i32_0 : i32, i32
  }
  func.func @transform_4(%arg0: i32) -> (i32, i32) {
    %c0_i32 = arith.constant 0 : i32
    %c0_i32_0 = arith.constant 0 : i32
    %c0_i32_1 = arith.constant 0 : i32
    return %c0_i32, %c0_i32_0 : i32, i32
  }
  func.func @transform_5(%arg0: i32) -> (i32, i32) {
    %c0_i32 = arith.constant 0 : i32
    %c0_i32_0 = arith.constant 0 : i32
    %c0_i32_1 = arith.constant 0 : i32
    return %c0_i32, %c0_i32_0 : i32, i32
  }
}

</mosaic_0001>

<bundles_post_ra>
// kernel: tile.29
= control target key start
LH: loop header
LB: loop body
LE: loop exit
PB: predicated region body
PF: predicated region fallthrough
CT: control target
= control target key end

     0   :  { %vm82_vm0 = vcmask 1047556   ;;  %vm84_vm1 = vcmask 523264   ;;  %vm103_vm2 = vcmask 1048064   ;;  %s225_s0 = inlined_call_operand.vmem [shape: f32[16,2,64], index: 0, kind: input, shape index: {}]   ;;  %s226_s1 = inlined_call_operand.vmem [shape: f32[16,128], index: 1, kind: output, shape index: {}]  }
   0x1   :  { %v138_v0 = vld [vmem:[%s225_s0 + $0xe] sm:$0x3]  ;;  %v139_v1 = vld [vmem:[%s225_s0 + $0xc] sm:$0x3]  ;;  %v140_v2 = vld [vmem:[%s225_s0 + $0xa] sm:$0x3] }
   0x2   :  { %48 = vst [vmem:[#allocation0 + $0x38] sm:$0x3] %v138_v0  ;;  %53 = vst [vmem:[#allocation0 + $0x30] sm:$0x3] %v139_v1  ;;  %v141_v3 = vld [vmem:[%s225_s0 + $0x8] sm:$0x3] }
   0x3   :  { %58 = vst [vmem:[#allocation0 + $0x28] sm:$0x3] %v140_v2  ;;  %v142_v4 = vld [vmem:[%s225_s0 + $0x6] sm:$0x3]  ;;  %v143_v5 = vld [vmem:[%s225_s0 + $0x4] sm:$0x3] }
   0x4   :  { %63 = vst [vmem:[#allocation0 + $0x20] sm:$0x3] %v141_v3  ;;  %68 = vst [vmem:[#allocation0 + $0x18] sm:$0x3] %v142_v4  ;;  %v144_v6 = vld [vmem:[%s225_s0 + $0x2] sm:$0x3] }
   0x5   :  { %73 = vst [vmem:[#allocation0 + $0x10] sm:$0x3] %v143_v5  ;;  %v78_v7 = vld [vmem:[%s225_s0] sm:$0x3]  ;;  %77 = vst [vmem:[#allocation0 + $0x8] sm:$0x3] %v144_v6 }
   0x6   :  { %79 = vst [vmem:[#allocation0] sm:$0x3] %v78_v7  ;;  %v130_v8 = vld [vmem:[%s225_s0 + $0x1e] sm:$0x3]  ;;  %v131_v9 = vld [vmem:[%s225_s0 + $0x1c] sm:$0x3] }
   0x7   :  { %v132_v10 = vld [vmem:[%s225_s0 + $0x1a] sm:$0x3]  ;;  %8 = vst [vmem:[#allocation0 + $0x78] sm:$0x3] %v130_v8  ;;  %13 = vst [vmem:[#allocation0 + $0x70] sm:$0x3] %v131_v9 }
   0x8   :  { %18 = vst [vmem:[#allocation0 + $0x68] sm:$0x3] %v132_v10  ;;  %v133_v11 = vld [vmem:[%s225_s0 + $0x18] sm:$0x3]  ;;  %v134_v12 = vld [vmem:[%s225_s0 + $0x16] sm:$0x3] }
   0x9   :  { %v135_v13 = vld [vmem:[%s225_s0 + $0x14] sm:$0x3]  ;;  %23 = vst [vmem:[#allocation0 + $0x60] sm:$0x3] %v133_v11  ;;  %28 = vst [vmem:[#allocation0 + $0x58] sm:$0x3] %v134_v12 }
   0xa   :  { %33 = vst [vmem:[#allocation0 + $0x50] sm:$0x3] %v135_v13  ;;  %v136_v14 = vld [vmem:[%s225_s0 + $0x12] sm:$0x3]  ;;  %v137_v15 = vld [vmem:[%s225_s0 + $0x10] sm:$0x3] }
   0xb   :  { %38 = vst [vmem:[#allocation0 + $0x48] sm:$0x3] %v136_v14  ;;  %43 = vst [vmem:[#allocation0 + $0x40] sm:$0x3] %v137_v15  ;;  %s148_s0 = smov 64  }
   0xc   :  { %v98_v16 = vld [vmem:[#allocation0 + $0x1] ss:$8 sm:$0xf0]   ;;  %v81_v17 = vld [vmem:[#allocation0] ss:$8 sm:$0xf0]  }
   0xd   :  { %v96_v18 = vld [vmem:[#allocation0 + $0x1] ss:$8 sm:$0xf]   ;;  %v80_v19 = vld [vmem:[#allocation0] ss:$8 sm:$0xf]  }
   0xe   :  { %v100_v20 = vsel %vm82_vm0, %v98_v16, %v96_v18  ;;  %v83_v21 = vsel %vm82_vm0, %v81_v17, %v80_v19 }
   0xf   :  { %101 = vrot.lane.b32.xlu0 %v100_v20, %s148_s0  ;;  %85 = vst.msk [vmem:[%s226_s1] sm:$0xff] %vm84_vm1, %v83_v21  }
  0x10   :  { %v108_v22 = vld [vmem:[#allocation0 + $0x41] ss:$8 sm:$0xf0]   ;;  %v89_v23 = vld [vmem:[#allocation0 + $0x40] ss:$8 sm:$0xf0]  }
  0x12   :  { %v106_v24 = vld [vmem:[#allocation0 + $0x41] ss:$8 sm:$0xf]   ;;  %v87_v25 = vld [vmem:[#allocation0 + $0x40] ss:$8 sm:$0xf]  }
  0x13   :  { %v110_v26 = vsel %vm82_vm0, %v108_v22, %v106_v24  ;;  %v91_v27 = vsel %vm82_vm0, %v89_v23, %v87_v25 }
  0x14   :  { %145 = vst.msk [vmem:[%s226_s1 + $0x8] sm:$0xff] %vm84_vm1, %v91_v27   ;;  %111 = vrot.lane.b32.xlu0 %v110_v26, %s148_s0 }
  0x81   :  { %v102_v28 = vpop.permute.xlu0 %101  }
  0x82   :  { %104 = vst.msk [vmem:[%s226_s1] sm:$0xff] %vm103_vm2, %v102_v28  }
  0x86   :  { %v112_v29 = vpop.permute.xlu0 %111  }
  0x87   :  { %146 = vst.msk [vmem:[%s226_s1 + $0x8] sm:$0xff] %vm103_vm2, %v112_v29  }

// kernel: tile.34
= control target key start
LH: loop header
LB: loop body
LE: loop exit
PB: predicated region body
PF: predicated region fallthrough
CT: control target
= control target key end

     0   :  { %vm21_vm0 = vcmask 523264   ;;  %vm27_vm1 = vcmask 1048064   ;;  %s67_s0 = inlined_call_operand.vmem [shape: f32[4,2,64], index: 0, kind: input, shape index: {}]   ;;  %s68_s1 = inlined_call_operand.vmem [shape: f32[4,128], index: 1, kind: output, shape index: {}]  }
   0x1   :  { %v37_v0 = vld [vmem:[%s67_s0 + $0x6] sm:$0x3]  ;;  %v38_v1 = vld [vmem:[%s67_s0 + $0x4] sm:$0x3]  ;;  %v39_v2 = vld [vmem:[%s67_s0 + $0x2] sm:$0x3] }
   0x2   :  { %8 = vst [vmem:[#allocation1 + $0x18] sm:$0x3] %v37_v0  ;;  %13 = vst [vmem:[#allocation1 + $0x10] sm:$0x3] %v38_v1  ;;  %v18_v3 = vld [vmem:[%s67_s0] sm:$0x3] }
   0x3   :  { %17 = vst [vmem:[#allocation1 + $0x8] sm:$0x3] %v39_v2  ;;  %19 = vst [vmem:[#allocation1] sm:$0x3] %v18_v3  ;;  %s41_s0 = smov 64  }
   0xa   :  { %v24_v4 = vld [vmem:[#allocation1 + $0x1] ss:$8 sm:$0xf]   ;;  %v20_v5 = vld [vmem:[#allocation1] ss:$8 sm:$0xf]  }
   0xb   :  { %25 = vrot.lane.b32.xlu0 %v24_v4, %s41_s0  ;;  %22 = vst.msk [vmem:[#allocation0] sm:$0xf] %vm21_vm0, %v20_v5  }
  0x7d   :  { %v26_v6 = vpop.permute.xlu0 %25  }
  0x7e   :  { %28 = vst.msk [vmem:[#allocation0] sm:$0xf] %vm27_vm1, %v26_v6  }
  0x85   :  { %v32_v7 = vld [vmem:[#allocation0] sm:$0xf] }
  0x86   :  { %34 = vst [vmem:[%s68_s1] sm:$0xf] %v32_v7 }

// kernel: mamba_block.1
= control target key start
LH: loop header
LB: loop body
LE: loop exit
PB: predicated region body
PF: predicated region fallthrough
CT: control target
= control target key end

     0   :  { %v1137_v3 = vmov 0.0   ;;  %vm42_vm0 = vcmask 523264   ;;  %vm1139_vm7 = vmmov 0   ;;  %vm837_vm8 = vcmask 1040384   ;;  %s1721_s1 = inlined_call_operand.vmem [shape: f32[64,256], index: 1, kind: input, shape index: {}]   ;;  %s1722_s0 = inlined_call_operand.vmem [shape: f32[8,64], index: 0, kind: input, shape index: {}]   ;;  %s1723_s2 = inlined_call_operand.vmem [shape: f32[128,192], index: 2, kind: input, shape index: {}]   ;;  %s1724_s4 = inlined_call_operand.vmem [shape: f32[24,128], index: 4, kind: input, shape index: {}]   ;;  %s1725_s3 = inlined_call_operand.vmem [shape: f32[128,64], index: 3, kind: input, shape index: {}]   ;;  %s1726_s5 = inlined_call_operand.vmem [shape: f32[8,64], index: 5, kind: output, shape index: {}]  }
   0x1   :  { %v27_v0 = vld [vmem:[%s1721_s1 + $0x8] sm:$0xff]  ;;  %v29_v1 = vld [vmem:[%s1721_s1 + $0x18] sm:$0xff]  ;;  %v26_v2 = vld [vmem:[%s1721_s1] sm:$0xff]  ;;  %110 = vmatprep.mubr.f32.mxu0 %v1137_v3  ;;  %263 = vmatprep.mubr.f32.mxu1 %v1137_v3  ;;  %vm839_vm9 = vcmask 1041408   ;;  %vm841_vm10 = vcmask 1042432   ;;  %vm843_vm11 = vcmask 1043456  }
   0x2   :  { %v1018_v4 = vpack.c.bf16 %v29_v1, %v27_v0  ;;  %v28_v5 = vld [vmem:[%s1721_s1 + $0x10] sm:$0xff]  ;;  %v31_v6 = vld [vmem:[%s1721_s1 + $0x28] sm:$0xff]  ;;  %v33_v7 = vld [vmem:[%s1721_s1 + $0x38] sm:$0xff]  ;;  %vm845_vm12 = vcmask 1044480   ;;  %vm847_vm13 = vcmask 1045504   ;;  %vm849_vm14 = vcmask 1046528  }
   0x3   :  { %v1020_v8 = vpack.c.bf16 %v28_v5, %v26_v2  ;;  %v1022_v9 = vpack.c.bf16 %v33_v7, %v31_v6  ;;  %v30_v10 = vld [vmem:[%s1721_s1 + $0x20] sm:$0xff]  ;;  %v32_v11 = vld [vmem:[%s1721_s1 + $0x30] sm:$0xff]  ;;  %v35_v12 = vld [vmem:[%s1721_s1 + $0x48] sm:$0xff] }
   0x4   :  { %1019 = vmatprep.subr.bf16.mxu0 %v1018_v4  ;;  %v37_v13 = vld [vmem:[%s1721_s1 + $0x58] sm:$0xff]  ;;  %v1024_v14 = vpack.c.bf16 %v32_v11, %v30_v10  ;;  %v34_v16 = vld [vmem:[%s1721_s1 + $0x40] sm:$0xff]  ;;  %v36_v17 = vld [vmem:[%s1721_s1 + $0x50] sm:$0xff]  ;;  %v117_v11 = vlaneseq }
   0x5   :  { %1021 = vmatpush1.bf16.msra.mxu0 %v1020_v8  ;;  %v1026_v15 = vpack.c.bf16 %v37_v13, %v35_v12  ;;  %v39_v18 = vld [vmem:[%s1721_s1 + $0x68] sm:$0xff]  ;;  %v41_v19 = vld [vmem:[%s1721_s1 + $0x78] sm:$0xff]  ;;  %v1028_v20 = vpack.c.bf16 %v36_v17, %v34_v16  ;;  %v38_v22 = vld [vmem:[%s1721_s1 + $0x60] sm:$0xff] }
   0x6   :  { %1023 = vmatprep.subr.bf16.mxu0 %v1022_v9  ;;  %v1030_v21 = vpack.c.bf16 %v41_v19, %v39_v18  ;;  %v40_v23 = vld [vmem:[%s1721_s1 + $0x70] sm:$0xff]  ;;  %v25_v25 = vld [vmem:[%s1722_s0] sm:$0xff]  ;;  %v168_v26 = vld [vmem:[%s1723_s2 + $0x8] sm:$0xff]  ;;  %v1321_v12 = vshrl.u32 %v117_v11, 7 }
   0x7   :  { %v1032_v24 = vpack.c.bf16 %v40_v23, %v38_v22  ;;  %v170_v27 = vld [vmem:[%s1723_s2 + $0x18] sm:$0xff]  ;;  %v167_v29 = vld [vmem:[%s1723_s2] sm:$0xff]  ;;  %v169_v30 = vld [vmem:[%s1723_s2 + $0x10] sm:$0xff] }
   0x8   :  { %v1034_v28 = vpack.c.bf16 %v170_v27, %v168_v26  ;;  %v1036_v31 = vpack.c.bf16 %v169_v30, %v167_v29  ;;  %v172_v32 = vld [vmem:[%s1723_s2 + $0x28] sm:$0xff]  ;;  %v174_v33 = vld [vmem:[%s1723_s2 + $0x38] sm:$0xff]  ;;  %v171_v35 = vld [vmem:[%s1723_s2 + $0x20] sm:$0xff]  ;;  %vm126_vm1 = vcmp.ge.s32.totalorder %v1321_v12, 3  ;;  %vm136_vm2 = vcmp.ge.s32.totalorder %v1321_v12, 2 }
   0x9   :  { %1025 = vmatpush1.bf16.msra.mxu0 %v1024_v14  ;;  %v1038_v34 = vpack.c.bf16 %v174_v33, %v172_v32  ;;  %v173_v36 = vld [vmem:[%s1723_s2 + $0x30] sm:$0xff]  ;;  %v176_v38 = vld [vmem:[%s1723_s2 + $0x48] sm:$0xff]  ;;  %v178_v39 = vld [vmem:[%s1723_s2 + $0x58] sm:$0xff]  ;;  %vm146_vm3 = vcmp.ge.s32.totalorder %v1321_v12, 1 }
   0xa   :  { %1027 = vmatprep.subr.bf16.mxu0 %v1026_v15  ;;  %1035 = vmatprep.subr.bf16.mxu1 %v1034_v28  ;;  %v1040_v37 = vpack.c.bf16 %v173_v36, %v171_v35  ;;  %v1042_v40 = vpack.c.bf16 %v178_v39, %v176_v38  ;;  %v175_v41 = vld [vmem:[%s1723_s2 + $0x40] sm:$0xff]  ;;  %v177_v42 = vld [vmem:[%s1723_s2 + $0x50] sm:$0xff]  ;;  %v180_v44 = vld [vmem:[%s1723_s2 + $0x68] sm:$0xff] }
   0xb   :  { %1037 = vmatpush1.bf16.msra.mxu1 %v1036_v31  ;;  %v1044_v43 = vpack.c.bf16 %v177_v42, %v175_v41  ;;  %v182_v45 = vld [vmem:[%s1723_s2 + $0x78] sm:$0xff]  ;;  %v179_v47 = vld [vmem:[%s1723_s2 + $0x60] sm:$0xff]  ;;  %v181_v48 = vld [vmem:[%s1723_s2 + $0x70] sm:$0xff] }
   0xc   :  { %1039 = vmatprep.subr.bf16.mxu1 %v1038_v34  ;;  %v1046_v46 = vpack.c.bf16 %v182_v45, %v180_v44  ;;  %v1048_v49 = vpack.c.bf16 %v181_v48, %v179_v47  ;;  %v184_v50 = vld [vmem:[%s1723_s2 + $0x88] sm:$0xff]  ;;  %v186_v51 = vld [vmem:[%s1723_s2 + $0x98] sm:$0xff]  ;;  %v183_v53 = vld [vmem:[%s1723_s2 + $0x80] sm:$0xff]  ;;  %v363_v47 = vsub.s32 1, %v1321_v12 }
   0xd   :  { %1029 = vmatpush1.bf16.msra.mxu0 %v1028_v20  ;;  %v1050_v52 = vpack.c.bf16 %v186_v51, %v184_v50  ;;  %v185_v54 = vld [vmem:[%s1723_s2 + $0x90] sm:$0xff]  ;;  %v188_v56 = vld [vmem:[%s1723_s2 + $0xa8] sm:$0xff]  ;;  %v190_v57 = vld [vmem:[%s1723_s2 + $0xb8] sm:$0xff] }
   0xe   :  { %1031 = vmatprep.subr.bf16.mxu0 %v1030_v21  ;;  %v1052_v55 = vpack.c.bf16 %v185_v54, %v183_v53  ;;  %v1054_v58 = vpack.c.bf16 %v190_v57, %v188_v56  ;;  %v187_v59 = vld [vmem:[%s1723_s2 + $0xa0] sm:$0xff]  ;;  %v189_v60 = vld [vmem:[%s1723_s2 + $0xb0] sm:$0xff]  ;;  %v192_v61 = vld [vmem:[%s1723_s2 + $0xc8] sm:$0xff]  ;;  %v499_v53 = vsub.s32 3, %v1321_v12 }
   0xf   :  { %1041 = vmatpush1.bf16.msra.mxu1 %v1040_v37  ;;  %v1056_v62 = vpack.c.bf16 %v189_v60, %v187_v59  ;;  %v194_v63 = vld [vmem:[%s1723_s2 + $0xd8] sm:$0xff]  ;;  %v191_v0 = vld [vmem:[%s1723_s2 + $0xc0] sm:$0xff]  ;;  %v193_v1 = vld [vmem:[%s1723_s2 + $0xd0] sm:$0xff]  ;;  %v567_v59 = vsub.s32 4, %v1321_v12 }
  0x10   :  { %1043 = vmatprep.subr.bf16.mxu1 %v1042_v40  ;;  %v1058_v2 = vpack.c.bf16 %v194_v63, %v192_v61  ;;  %v196_v4 = vld [vmem:[%s1723_s2 + $0xe8] sm:$0xff]  ;;  %v198_v5 = vld [vmem:[%s1723_s2 + $0xf8] sm:$0xff]  ;;  %v1060_v6 = vpack.c.bf16 %v193_v1, %v191_v0  ;;  %v195_v8 = vld [vmem:[%s1723_s2 + $0xe0] sm:$0xff]  ;;  %v295_v40 = vsub.s32 0, %v1321_v12  ;;  %v635_v1 = vsub.s32 5, %v1321_v12 }
  0x11   :  { %1033 = vmatpush1.bf16.msra.mxu0 %v1032_v24  ;;  %v1062_v7 = vpack.c.bf16 %v198_v5, %v196_v4  ;;  %v197_v9 = vld [vmem:[%s1723_s2 + $0xf0] sm:$0xff] }
  0x12   :  { %v1064_v10 = vpack.c.bf16 %v197_v9, %v195_v8  ;;  %v957_v14 = vld [vmem:[%s1724_s4 + $0x13] ss:$0 sm:$0xff]  ;;  %v958_v16 = vld [vmem:[%s1724_s4 + $0x10] ss:$0 sm:$0xff]  ;;  %v959_v22 = vld [vmem:[%s1724_s4 + $0x11] ss:$0 sm:$0xff] }
  0x13   :  { %1045 = vmatpush1.bf16.msra.mxu1 %v1044_v43  ;;  %v960_v26 = vld [vmem:[%s1724_s4 + $0x12] ss:$0 sm:$0xff]  ;;  %v961_v31 = vld [vmem:[%s1724_s4 + $0x14] ss:$0 sm:$0xff]  ;;  %v963_v39 = vld [vmem:[%s1724_s4 + $0x15] ss:$0 sm:$0xff] }
  0x14   :  { %956 = vmatmul.mubr.msk.f32.vlgmr.msra.gmra.mrb[0].mxu0 %vm42_vm0, %v25_v25  ;;  %1047 = vmatprep.subr.bf16.mxu1 %v1046_v46 }
  0x15   :  { %1015 = vmatprep.mubr.msk.f32.mxu0 %vm1139_vm7, %v1137_v3 }
  0x17   :  { %1049 = vmatpush1.bf16.msra.mxu1 %v1048_v49  ;;  %v431_v49 = vsub.s32 2, %v1321_v12 }
  0x18   :  { %1051 = vmatprep.subr.bf16.mxu1 %v1050_v52 }
  0x1b   :  { %1053 = vmatpush1.bf16.msra.mxu1 %v1052_v55 }
  0x1c   :  { %1055 = vmatprep.subr.bf16.mxu1 %v1054_v58 }
  0x1f   :  { %1057 = vmatpush1.bf16.msra.mxu1 %v1056_v62 }
  0x20   :  { %1059 = vmatprep.subr.bf16.mxu1 %v1058_v2 }
  0x23   :  { %1061 = vmatpush1.bf16.msra.mxu1 %v1060_v6 }
  0x24   :  { %1063 = vmatprep.subr.bf16.mxu1 %v1062_v7  ;;  %v703_v7 = vsub.s32 6, %v1321_v12 }
  0x27   :  { %1065 = vmatpush1.bf16.msra.mxu1 %v1064_v10 }
  0xe7   :  { %v112_v13 = vpop.f32.mrb[0].mxu0 }
  0xe8   :  { %v125_v15 = vrot.slane %v112_v13, 5  ;;  %v135_v17 = vrot.slane %v112_v13, 6  ;;  %v145_v18 = vrot.slane %v112_v13, 7  ;;  %v1331_v19 = vpop.f32.mrb[1].mxu0  ;;  %v124_v23 = vmul.f32 %v957_v14, %v112_v13 }
  0xea   :  { %v127_v20 = vsel %vm126_vm1, %v125_v15, 0.0  ;;  %v137_v21 = vsel %vm136_vm2, %v135_v17, 0.0  ;;  %v147_v25 = vsel %vm146_vm3, %v145_v18, 0.0 }
  0xeb   :  { %v133_v24 = vmul.f32 %v958_v16, %v127_v20  ;;  %v143_v28 = vmul.f32 %v959_v22, %v137_v21  ;;  %v153_v30 = vmul.f32 %v960_v26, %v147_v25  ;;  %v771_v21 = vsub.s32 7, %v1321_v12 }
  0xed   :  { %v134_v27 = vadd.f32 %v133_v24, %v124_v23 }
  0xef   :  { %v144_v29 = vadd.f32 %v143_v28, %v134_v27  ;;  %v1459_v27 = vld [vmem:[%s1724_s4] sm:$0xff] }
  0xf1   :  { %v154_v32 = vadd.f32 %v153_v30, %v144_v29  ;;  %v1467_v29 = vld [vmem:[%s1724_s4 + $0x8] sm:$0xff] }
  0xf3   :  { %v159_v33 = vadd.f32 %v961_v31, %v154_v32 }
  0xf5   :  { %v962_v34 = vmul.f32 -1.442695, %v159_v33 }
  0xf7   :  { %1093 = vpow2.f32 %v962_v34 }
 0x101   :  { %v1094_v35 = vpop.eup %1093 }
 0x102   :  { %v163_v36 = vadd.f32 1.0, %v1094_v35 }
 0x104   :  { %1095 = vrcp.f32 %v163_v36  ;;  %v1477_v36 = vand.u32 127, %v117_v11 }
 0x106   :  { %vm292_vm6 = vcmp.ge.s32.totalorder %v1477_v36, 64  ;;  %v964_v36 = vld [vmem:[%s1724_s4 + $0x16] ss:$0 sm:$0xff] }
 0x10e   :  { %v1096_v37 = vpop.eup %1095 }
 0x10f   :  { %v1343_v38 = vmul.f32 %v1096_v37, %v159_v33 }
 0x111   :  { %264 = vmatmul.mubr.f32.vlgmr.msra.gmra.mrb[0].mxu1 %v1343_v38 }
 0x1e4   :  { %v265_v41 = vpop.f32.mrb[0].mxu1 }
 0x1e5   :  { %v274_v42 = vadd.f32 %v963_v39, %v265_v41  ;;  %v1350_v43 = vpop.f32.mrb[1].mxu1  ;;  %v1138_v39 = vmov 0.0|0.0   ;;  %v866_v41 = vld [vmem:[%s1725_s3 + $0x8] sm:$0xff] }
 0x1e6   :  { %v1353_v44 = vrot.slane %v1350_v43, %v295_v40  ;;  %v1361_v48 = vrot.slane %v1350_v43, %v363_v47  ;;  %v1369_v52 = vrot.slane %v1350_v43, %v431_v49  ;;  %v1377_v55 = vrot.slane %v1350_v43, %v499_v53  ;;  %1066 = vmatprep.subr.bf16.mxu0 %v1138_v39 }
 0x1e7   :  { %v276_v45 = vmin.f32 %v274_v42, 20.0  ;;  %vm275_vm5 = vcmp.gt.f32.partialorder %v274_v42, 20.0  ;;  %v1385_v0 = vrot.slane %v1350_v43, %v567_v59  ;;  %v646_v23 = vrot.slane %v1350_v43, %v635_v1 }
 0x1e8   :  { %316 = vbcast.lane.b32.xlu1 %v1353_v44, 272  ;;  %308 = vbcast.lane.b32.xlu0 %v1353_v44, 256  ;;  %v1427_v26 = vrot.slane %v1350_v43, %v703_v7  ;;  %v1450_v12 = vrot.slane %v1350_v43, %v771_v21 }
 0x1e9   :  { %v277_v46 = vmul.f32 1.442695, %v276_v45 }
 0x1eb   :  { %1097 = vpow2.f32 %v277_v46 }
 0x1ec   :  { %320 = vbcast.lane.b32.xlu1 %v1353_v44, 280  ;;  %312 = vbcast.lane.b32.xlu0 %v1353_v44, 264 }
 0x1f0   :  { %380 = vbcast.lane.b32.xlu1 %v1361_v48, 264  ;;  %376 = vbcast.lane.b32.xlu0 %v1361_v48, 256 }
 0x1f4   :  { %388 = vbcast.lane.b32.xlu1 %v1361_v48, 280  ;;  %384 = vbcast.lane.b32.xlu0 %v1361_v48, 272 }
 0x1f5   :  { %v1098_v50 = vpop.eup %1097 }
 0x1f6   :  { %v279_v51 = vadd.f32 1.0, %v1098_v50  ;;  %v282_v54 = vmul.f32 -0.5, %v1098_v50  ;;  %v285_v57 = vand.u32 2147483647, %v1098_v50 }
 0x1f8   :  { %1099 = vlog2.f32 %v279_v51  ;;  %448 = vbcast.lane.b32.xlu1 %v1369_v52, 264  ;;  %444 = vbcast.lane.b32.xlu0 %v1369_v52, 256  ;;  %v283_v56 = vadd.f32 1.0, %v282_v54  ;;  %vm286_vm4 = vcmp.lt.f32.partialorder %v285_v57, 0.0004427343  ;;  %v868_v54 = vld [vmem:[%s1725_s3 + $0x18] sm:$0xff] }
 0x1fa   :  { %v284_v61 = vmul.f32 %v1098_v50, %v283_v56 }
 0x1fc   :  { %456 = vbcast.lane.b32.xlu1 %v1369_v52, 280  ;;  %452 = vbcast.lane.b32.xlu0 %v1369_v52, 272 }
 0x200   :  { %516 = vbcast.lane.b32.xlu1 %v1377_v55, 264  ;;  %512 = vbcast.lane.b32.xlu0 %v1377_v55, 256 }
 0x202   :  { %v1100_v58 = vpop.eup %1099 }
 0x203   :  { %v281_v60 = vmul.f32 0.6931472, %v1100_v58 }
 0x204   :  { %524 = vbcast.lane.b32.xlu1 %v1377_v55, 280  ;;  %520 = vbcast.lane.b32.xlu0 %v1377_v55, 272 }
 0x205   :  { %v287_v62 = vsel %vm286_vm4, %v284_v61, %v281_v60  ;;  %v870_v60 = vld [vmem:[%s1725_s3 + $0x28] sm:$0xff] }
 0x206   :  { %v288_v63 = vsel %vm275_vm5, %v274_v42, %v287_v62 }
 0x207   :  { %v289_v2 = vmul.f32 %v288_v63, %v1343_v38  ;;  %v296_v4 = vrot.slane %v288_v63, %v295_v40  ;;  %v1389_v5 = vrot.slane %v288_v63, %v363_v47  ;;  %v1391_v6 = vrot.slane %v288_v63, %v431_v49 }
 0x208   :  { %584 = vbcast.lane.b32.xlu1 %v1385_v0, 264  ;;  %580 = vbcast.lane.b32.xlu0 %v1385_v0, 256  ;;  %v1396_v8 = vrot.slane %v288_v63, %v499_v53  ;;  %v1398_v9 = vrot.slane %v288_v63, %v567_v59  ;;  %v1400_v10 = vrot.slane %v288_v63, %v635_v1 }
 0x209   :  { %v1402_v13 = vrot.slane %v289_v2, %v295_v40  ;;  %v1404_v14 = vrot.slane %v289_v2, %v363_v47  ;;  %v1406_v15 = vrot.slane %v289_v2, %v431_v49  ;;  %v1408_v16 = vrot.slane %v289_v2, %v499_v53  ;;  %v865_v40 = vld [vmem:[%s1725_s3] sm:$0xff]  ;;  %v867_v53 = vld [vmem:[%s1725_s3 + $0x10] sm:$0xff] }
 0x20a   :  { %v1410_v17 = vrot.slane %v289_v2, %v567_v59  ;;  %v1412_v18 = vrot.slane %v289_v2, %v635_v1  ;;  %v1414_v20 = vrot.slane %v289_v2, %v703_v7  ;;  %v1419_v22 = vrot.slane %v289_v2, %v771_v21  ;;  %v869_v59 = vld [vmem:[%s1725_s3 + $0x20] sm:$0xff] }
 0x20b   :  { %v1422_v24 = vrot.slane %v288_v63, %v703_v7  ;;  %v1424_v25 = vrot.slane %v288_v63, %v771_v21  ;;  %v297_v28 = vmul.f32 %v296_v4, %v1459_v27  ;;  %v298_v30 = vmul.f32 %v296_v4, %v1467_v29 }
 0x20c   :  { %592 = vbcast.lane.b32.xlu1 %v1385_v0, 280  ;;  %588 = vbcast.lane.b32.xlu0 %v1385_v0, 272  ;;  %v365_v32 = vmul.f32 %v1389_v5, %v1459_v27  ;;  %v366_v34 = vmul.f32 %v1389_v5, %v1467_v29  ;;  %v434_v11 = vmul.f32 %v1391_v6, %v1467_v29 }
 0x20d   :  { %v299_v31 = vmul.f32 1.442695, %v297_v28  ;;  %v301_v33 = vmul.f32 1.442695, %v298_v30  ;;  %v1067_v42 = vpack.c.bf16 %v866_v41, %v865_v40  ;;  %v1070_v58 = vpack.c.bf16 %v868_v54, %v867_v53 }
 0x20e   :  { %v367_v35 = vmul.f32 1.442695, %v365_v32  ;;  %v369_v37 = vmul.f32 1.442695, %v366_v34  ;;  %v437_v50 = vmul.f32 1.442695, %v434_v11  ;;  %v502_v63 = vmul.f32 %v1396_v8, %v1467_v29 }
 0x20f   :  { %1101 = vpow2.f32 %v299_v31  ;;  %1068 = vmatpush3.bf16.msra.mxu0 %v1067_v42  ;;  %v501_v4 = vmul.f32 %v1396_v8, %v1459_v27  ;;  %v1073_v5 = vpack.c.bf16 %v870_v60, %v869_v59  ;;  %v871_v31 = vld [vmem:[%s1725_s3 + $0x30] sm:$0xff]  ;;  %v872_v32 = vld [vmem:[%s1725_s3 + $0x38] sm:$0xff]  ;;  %v570_v11 = vmul.f32 %v1398_v9, %v1467_v29 }
 0x210   :  { %652 = vbcast.lane.b32.xlu1 %v646_v23, 264  ;;  %648 = vbcast.lane.b32.xlu0 %v646_v23, 256  ;;  %1103 = vpow2.f32 %v301_v33  ;;  %v569_v42 = vmul.f32 %v1398_v9, %v1459_v27 }
 0x211   :  { %1105 = vpow2.f32 %v367_v35  ;;  %1069 = vmatprep.subr.bf16.mxu0 %v1138_v39  ;;  %v503_v28 = vmul.f32 1.442695, %v501_v4  ;;  %v1076_v35 = vpack.c.bf16 %v872_v32, %v871_v31 }
 0x212   :  { %1107 = vpow2.f32 %v369_v37  ;;  %v874_v37 = vld [vmem:[%s1725_s3 + $0x48] sm:$0xff] }
 0x213   :  { %1109 = vpow2.f32 %v437_v50  ;;  %1071 = vmatpush3.bf16.msra.mxu0 %v1070_v58  ;;  %v878_v58 = vld [vmem:[%s1725_s3 + $0x68] sm:$0xff] }
 0x214   :  { %660 = vbcast.lane.b32.xlu1 %v646_v23, 280  ;;  %656 = vbcast.lane.b32.xlu0 %v646_v23, 272 }
 0x215   :  { %1072 = vmatprep.subr.bf16.mxu0 %v1138_v39 }
 0x217   :  { %1074 = vmatpush3.bf16.msra.mxu0 %v1073_v5 }
 0x218   :  { %720 = vbcast.lane.b32.xlu1 %v1427_v26, 264  ;;  %716 = vbcast.lane.b32.xlu0 %v1427_v26, 256 }
 0x219   :  { %v1102_v43 = vpop.eup %1101  ;;  %1075 = vmatprep.subr.bf16.mxu0 %v1138_v39 }
 0x21a   :  { %v342_v49 = vmul.f32 0.0, %v1102_v43  ;;  %v1104_v51 = vpop.eup %1103 }
 0x21b   :  { %v1106_v61 = vpop.eup %1105  ;;  %v343_v1 = vmul.f32 0.0, %v1104_v51  ;;  %1077 = vmatpush3.bf16.msra.mxu0 %v1076_v35  ;;  %v573_v51 = vmul.f32 1.442695, %v570_v11 }
 0x21c   :  { %728 = vbcast.lane.b32.xlu1 %v1427_v26, 280  ;;  %724 = vbcast.lane.b32.xlu0 %v1427_v26, 272 }
 0x21d   :  { %1078 = vmatprep.subr.bf16.mxu0 %v1138_v39 }
 0x220   :  { %328 = vbcast.lane.b32.xlu1 %v1353_v44, 296  ;;  %324 = vbcast.lane.b32.xlu0 %v1353_v44, 288 }
 0x224   :  { %336 = vbcast.lane.b32.xlu1 %v1353_v44, 312  ;;  %332 = vbcast.lane.b32.xlu0 %v1353_v44, 304  ;;  %v433_v44 = vmul.f32 %v1391_v6, %v1459_v27 }
 0x228   :  { %396 = vbcast.lane.b32.xlu1 %v1361_v48, 296  ;;  %392 = vbcast.lane.b32.xlu0 %v1361_v48, 288 }
 0x22c   :  { %404 = vbcast.lane.b32.xlu1 %v1361_v48, 312  ;;  %400 = vbcast.lane.b32.xlu0 %v1361_v48, 304 }
 0x230   :  { %464 = vbcast.lane.b32.xlu1 %v1369_v52, 296  ;;  %460 = vbcast.lane.b32.xlu0 %v1369_v52, 288 }
 0x234   :  { %472 = vbcast.lane.b32.xlu1 %v1369_v52, 312  ;;  %468 = vbcast.lane.b32.xlu0 %v1369_v52, 304  ;;  %v435_v52 = vmul.f32 1.442695, %v433_v44 }
 0x236   :  { %1111 = vpow2.f32 %v435_v52  ;;  %v571_v52 = vmul.f32 1.442695, %v569_v42 }
 0x238   :  { %532 = vbcast.lane.b32.xlu1 %v1377_v55, 296  ;;  %528 = vbcast.lane.b32.xlu0 %v1377_v55, 288 }
 0x23c   :  { %540 = vbcast.lane.b32.xlu1 %v1377_v55, 312  ;;  %536 = vbcast.lane.b32.xlu0 %v1377_v55, 304 }
 0x240   :  { %788 = vbcast.lane.b32.xlu1 %v1450_v12, 264  ;;  %784 = vbcast.lane.b32.xlu0 %v1450_v12, 256 }
 0x244   :  { %796 = vbcast.lane.b32.xlu1 %v1450_v12, 280  ;;  %792 = vbcast.lane.b32.xlu0 %v1450_v12, 272 }
 0x248   :  { %600 = vbcast.lane.b32.xlu1 %v1385_v0, 296  ;;  %596 = vbcast.lane.b32.xlu0 %v1385_v0, 288 }
 0x24c   :  { %608 = vbcast.lane.b32.xlu1 %v1385_v0, 312  ;;  %604 = vbcast.lane.b32.xlu0 %v1385_v0, 304 }
 0x250   :  { %668 = vbcast.lane.b32.xlu1 %v646_v23, 296  ;;  %664 = vbcast.lane.b32.xlu0 %v646_v23, 288 }
 0x254   :  { %676 = vbcast.lane.b32.xlu1 %v646_v23, 312  ;;  %672 = vbcast.lane.b32.xlu0 %v646_v23, 304 }
 0x258   :  { %736 = vbcast.lane.b32.xlu1 %v1427_v26, 296  ;;  %732 = vbcast.lane.b32.xlu0 %v1427_v26, 288 }
 0x25a   :  { %v317_v45 = vpop.permute.xlu1 %316  ;;  %v309_v46 = vpop.permute.xlu0 %308 }
 0x25b   :  { %v338_v47 = vsel %vm292_vm6, %v317_v45, %v309_v46 }
 0x25c   :  { %v348_v48 = vmul.f32 %v1402_v13, %v338_v47  ;;  %744 = vbcast.lane.b32.xlu1 %v1427_v26, 312  ;;  %740 = vbcast.lane.b32.xlu0 %v1427_v26, 304  ;;  %v505_v26 = vmul.f32 1.442695, %v502_v63  ;;  %v638_v63 = vmul.f32 %v1400_v10, %v1467_v29 }
 0x25e   :  { %v321_v55 = vpop.permute.xlu1 %320  ;;  %v313_v56 = vpop.permute.xlu0 %312  ;;  %v1505_v57 = vadd.f32 %v348_v48, %v342_v49  ;;  %1113 = vpow2.f32 %v505_v26  ;;  %v876_v48 = vld [vmem:[%s1725_s3 + $0x58] sm:$0xff] }
 0x25f   :  { %v339_v62 = vsel %vm292_vm6, %v321_v55, %v313_v56  ;;  %1115 = vpow2.f32 %v503_v28  ;;  %v877_v56 = vld [vmem:[%s1725_s3 + $0x60] sm:$0xff]  ;;  %v641_v28 = vmul.f32 1.442695, %v638_v63 }
 0x260   :  { %v349_v0 = vmul.f32 %v1402_v13, %v339_v62  ;;  %804 = vbcast.lane.b32.xlu1 %v1450_v12, 296  ;;  %800 = vbcast.lane.b32.xlu0 %v1450_v12, 288  ;;  %v410_v2 = vmul.f32 %v1106_v61, %v1505_v57  ;;  %v1108_v13 = vpop.eup %1107  ;;  %1117 = vpow2.f32 %v573_v51 }
 0x261   :  { %v1110_v44 = vpop.eup %1109  ;;  %1119 = vpow2.f32 %v571_v52  ;;  %v774_v52 = vmul.f32 %v1424_v25, %v1467_v29 }
 0x262   :  { %v381_v6 = vpop.permute.xlu1 %380  ;;  %v377_v7 = vpop.permute.xlu0 %376  ;;  %v1523_v21 = vadd.f32 %v349_v0, %v343_v1  ;;  %v637_v0 = vmul.f32 %v1400_v10, %v1459_v27  ;;  %v1085_v1 = vpack.c.bf16 %v878_v58, %v877_v56  ;;  %1121 = vpow2.f32 %v641_v28 }
 0x263   :  { %v1112_v9 = vpop.eup %1111 }
 0x264   :  { %812 = vbcast.lane.b32.xlu1 %v1450_v12, 312  ;;  %808 = vbcast.lane.b32.xlu0 %v1450_v12, 304  ;;  %v411_v23 = vmul.f32 %v1108_v13, %v1523_v21  ;;  %v873_v12 = vld [vmem:[%s1725_s3 + $0x40] sm:$0xff]  ;;  %v880_v13 = vld [vmem:[%s1725_s3 + $0x78] sm:$0xff] }
 0x265   :  { %v1079_v43 = vpack.c.bf16 %v874_v37, %v873_v12  ;;  %v706_v37 = vmul.f32 %v1422_v24, %v1467_v29 }
 0x266   :  { %v389_v30 = vpop.permute.xlu1 %388  ;;  %v385_v8 = vpop.permute.xlu0 %384 }
 0x267   :  { %v407_v33 = vsel %vm292_vm6, %v389_v30, %v381_v6  ;;  %v406_v34 = vsel %vm292_vm6, %v385_v8, %v377_v7  ;;  %1080 = vmatpush3.bf16.msra.mxu0 %v1079_v43  ;;  %v639_v30 = vmul.f32 1.442695, %v637_v0 }
 0x268   :  { %v417_v40 = vmul.f32 %v1404_v14, %v407_v33  ;;  %v416_v41 = vmul.f32 %v1404_v14, %v406_v34  ;;  %v875_v14 = vld [vmem:[%s1725_s3 + $0x50] sm:$0xff]  ;;  %1081 = vmatprep.subr.bf16.mxu0 %v1138_v39 }
 0x269   :  { %v1082_v53 = vpack.c.bf16 %v876_v48, %v875_v14  ;;  %1123 = vpow2.f32 %v639_v30 }
 0x26a   :  { %v449_v45 = vpop.permute.xlu1 %448  ;;  %v445_v46 = vpop.permute.xlu0 %444  ;;  %v1553_v47 = vadd.f32 %v417_v40, %v411_v23  ;;  %v1555_v3 = vadd.f32 %v416_v41, %v410_v2  ;;  %v705_v40 = vmul.f32 %v1422_v24, %v1459_v27 }
 0x26b   :  { %1083 = vmatpush3.bf16.msra.mxu0 %v1082_v53  ;;  %v1114_v2 = vpop.eup %1113  ;;  %v773_v53 = vmul.f32 %v1424_v25, %v1459_v27 }
 0x26c   :  { %v479_v49 = vmul.f32 %v1110_v44, %v1553_v47  ;;  %v478_v50 = vmul.f32 %v1112_v9, %v1555_v3  ;;  %1084 = vmatprep.subr.bf16.mxu0 %v1138_v39  ;;  %v1116_v10 = vpop.eup %1115  ;;  %v707_v14 = vmul.f32 1.442695, %v705_v40 }
 0x26d   :  { %v775_v63 = vmul.f32 1.442695, %v773_v53 }
 0x26e   :  { %v457_v54 = vpop.permute.xlu1 %456  ;;  %v453_v55 = vpop.permute.xlu0 %452 }
 0x26f   :  { %v475_v59 = vsel %vm292_vm6, %v457_v54, %v449_v45  ;;  %v474_v60 = vsel %vm292_vm6, %v453_v55, %v445_v46  ;;  %1086 = vmatpush3.bf16.msra.mxu0 %v1085_v1  ;;  %v709_v46 = vmul.f32 1.442695, %v706_v37 }
 0x270   :  { %v485_v61 = vmul.f32 %v1406_v15, %v475_v59  ;;  %v484_v62 = vmul.f32 %v1406_v15, %v474_v60  ;;  %v879_v15 = vld [vmem:[%s1725_s3 + $0x70] sm:$0xff]  ;;  %1087 = vmatprep.subr.bf16.mxu0 %v1138_v39  ;;  %v1118_v39 = vpop.eup %1117 }
 0x271   :  { %v1088_v8 = vpack.c.bf16 %v880_v13, %v879_v15  ;;  %v1120_v44 = vpop.eup %1119  ;;  %1125 = vpow2.f32 %v709_v46 }
 0x272   :  { %v517_v4 = vpop.permute.xlu1 %516  ;;  %v513_v5 = vpop.permute.xlu0 %512  ;;  %v1583_v6 = vadd.f32 %v485_v61, %v479_v49  ;;  %v1585_v7 = vadd.f32 %v484_v62, %v478_v50  ;;  %1127 = vpow2.f32 %v707_v14  ;;  %v777_v62 = vmul.f32 1.442695, %v774_v52 }
 0x273   :  { %1089 = vmatpush3.bf16.msra.mxu0 %v1088_v8  ;;  %v1122_v54 = vpop.eup %1121 }
 0x274   :  { %v547_v23 = vmul.f32 %v1114_v2, %v1583_v6  ;;  %v546_v26 = vmul.f32 %v1116_v10, %v1585_v7  ;;  %v1124_v60 = vpop.eup %1123  ;;  %1129 = vpow2.f32 %v777_v62 }
 0x275   :  { %1131 = vpow2.f32 %v775_v63 }
 0x276   :  { %v525_v31 = vpop.permute.xlu1 %524  ;;  %v521_v32 = vpop.permute.xlu0 %520 }
 0x277   :  { %v543_v12 = vsel %vm292_vm6, %v525_v31, %v517_v4  ;;  %v542_v33 = vsel %vm292_vm6, %v521_v32, %v513_v5 }
 0x278   :  { %v553_v34 = vmul.f32 %v1408_v16, %v543_v12  ;;  %v552_v35 = vmul.f32 %v1408_v16, %v542_v33 }
 0x27a   :  { %v585_v41 = vpop.permute.xlu1 %584  ;;  %v581_v11 = vpop.permute.xlu0 %580  ;;  %v1607_v42 = vadd.f32 %v553_v34, %v547_v23  ;;  %v1609_v43 = vadd.f32 %v552_v35, %v546_v26 }
 0x27b   :  { %v1126_v4 = vpop.eup %1125 }
 0x27c   :  { %v615_v45 = vmul.f32 %v1118_v39, %v1607_v42  ;;  %v614_v16 = vmul.f32 %v1120_v44, %v1609_v43  ;;  %v1128_v23 = vpop.eup %1127 }
 0x27e   :  { %v593_v48 = vpop.permute.xlu1 %592  ;;  %v589_v9 = vpop.permute.xlu0 %588 }
 0x27f   :  { %v611_v24 = vsel %vm292_vm6, %v593_v48, %v585_v41  ;;  %v610_v49 = vsel %vm292_vm6, %v589_v9, %v581_v11  ;;  %v1130_v33 = vpop.eup %1129 }
 0x280   :  { %v621_v50 = vmul.f32 %v1410_v17, %v611_v24  ;;  %v620_v51 = vmul.f32 %v1410_v17, %v610_v49  ;;  %v1132_v39 = vpop.eup %1131 }
 0x282   :  { %v653_v55 = vpop.permute.xlu1 %652  ;;  %v649_v56 = vpop.permute.xlu0 %648  ;;  %v1623_v58 = vadd.f32 %v621_v50, %v615_v45  ;;  %v1625_v59 = vadd.f32 %v620_v51, %v614_v16 }
 0x284   :  { %v683_v61 = vmul.f32 %v1122_v54, %v1623_v58  ;;  %v682_v17 = vmul.f32 %v1124_v60, %v1625_v59 }
 0x286   :  { %v661_v0 = vpop.permute.xlu1 %660  ;;  %v657_v29 = vpop.permute.xlu0 %656 }
 0x287   :  { %v679_v1 = vsel %vm292_vm6, %v661_v0, %v653_v55  ;;  %v678_v25 = vsel %vm292_vm6, %v657_v29, %v649_v56 }
 0x288   :  { %v689_v27 = vmul.f32 %v1412_v18, %v679_v1  ;;  %v688_v2 = vmul.f32 %v1412_v18, %v678_v25 }
 0x28a   :  { %v721_v5 = vpop.permute.xlu1 %720  ;;  %v717_v15 = vpop.permute.xlu0 %716  ;;  %v1635_v13 = vadd.f32 %v689_v27, %v683_v61  ;;  %v1637_v10 = vadd.f32 %v688_v2, %v682_v17 }
 0x28c   :  { %v751_v26 = vmul.f32 %v1126_v4, %v1635_v13  ;;  %v750_v28 = vmul.f32 %v1128_v23, %v1637_v10 }
 0x28e   :  { %v729_v30 = vpop.permute.xlu1 %728  ;;  %v725_v8 = vpop.permute.xlu0 %724 }
 0x28f   :  { %v747_v31 = vsel %vm292_vm6, %v729_v30, %v721_v5  ;;  %v746_v18 = vsel %vm292_vm6, %v725_v8, %v717_v15 }
 0x290   :  { %v757_v32 = vmul.f32 %v1414_v20, %v747_v31  ;;  %v756_v12 = vmul.f32 %v1414_v20, %v746_v18 }
 0x292   :  { %v329_v34 = vpop.permute.xlu1 %328  ;;  %v325_v35 = vpop.permute.xlu0 %324  ;;  %v1647_v37 = vadd.f32 %v757_v32, %v751_v26  ;;  %v1649_v40 = vadd.f32 %v756_v12, %v750_v28 }
 0x294   :  { %v1652_v41 = vmul.f32 %v1130_v33, %v1647_v37  ;;  %v1655_v11 = vmul.f32 %v1132_v39, %v1649_v40 }
 0x296   :  { %v337_v44 = vpop.permute.xlu1 %336  ;;  %v333_v45 = vpop.permute.xlu0 %332 }
 0x297   :  { %v341_v16 = vsel %vm292_vm6, %v337_v44, %v329_v34  ;;  %v340_v20 = vsel %vm292_vm6, %v333_v45, %v325_v35 }
 0x298   :  { %v353_v46 = vmul.f32 %v1523_v21, %v341_v16  ;;  %v352_v14 = vmul.f32 %v1505_v57, %v340_v20 }
 0x29a   :  { %v354_v48 = vadd.f32 %v353_v46, %v352_v14  ;;  %v397_v9 = vpop.permute.xlu1 %396  ;;  %v393_v24 = vpop.permute.xlu0 %392 }
 0x29c   :  { %v355_v49 = vrot.slane %v354_v48, 4 }
 0x29e   :  { %v356_v50 = vadd.f32 %v355_v49, %v354_v48  ;;  %v405_v51 = vpop.permute.xlu1 %404  ;;  %v401_v52 = vpop.permute.xlu0 %400 }
 0x29f   :  { %v409_v53 = vsel %vm292_vm6, %v405_v51, %v397_v9  ;;  %v408_v54 = vsel %vm292_vm6, %v401_v52, %v393_v24 }
 0x2a0   :  { %v421_v55 = vmul.f32 %v1553_v47, %v409_v53  ;;  %v420_v56 = vmul.f32 %v1555_v3, %v408_v54  ;;  %v357_v21 = vrot.slane %v356_v50, 2 }
 0x2a2   :  { %v422_v60 = vadd.f32 %v421_v55, %v420_v56  ;;  %v465_v57 = vpop.permute.xlu1 %464  ;;  %v461_v61 = vpop.permute.xlu0 %460  ;;  %v358_v62 = vadd.f32 %v357_v21, %v356_v50 }
 0x2a4   :  { %v423_v17 = vrot.slane %v422_v60, 4  ;;  %v359_v2 = vrot.slane %v358_v62, 1 }
 0x2a6   :  { %v424_v63 = vadd.f32 %v423_v17, %v422_v60  ;;  %v473_v0 = vpop.permute.xlu1 %472  ;;  %v469_v29 = vpop.permute.xlu0 %468  ;;  %v360_v30 = vadd.f32 %v359_v2, %v358_v62 }
 0x2a7   :  { %v477_v1 = vsel %vm292_vm6, %v473_v0, %v465_v57  ;;  %v476_v25 = vsel %vm292_vm6, %v469_v29, %v461_v61 }
 0x2a8   :  { %v425_v27 = vrot.slane %v424_v63, 2  ;;  %v489_v47 = vmul.f32 %v1583_v6, %v477_v1  ;;  %v488_v3 = vmul.f32 %v1585_v7, %v476_v25 }
 0x2aa   :  { %v426_v4 = vadd.f32 %v425_v27, %v424_v63  ;;  %v490_v5 = vadd.f32 %v489_v47, %v488_v3  ;;  %v533_v15 = vpop.permute.xlu1 %532  ;;  %v529_v23 = vpop.permute.xlu0 %528  ;;  %v965_v27 = vmul.f32 -1.442695, %v1331_v19 }
 0x2ac   :  { %v427_v26 = vrot.slane %v426_v4, 1  ;;  %v491_v28 = vrot.slane %v490_v5, 4  ;;  %1133 = vpow2.f32 %v965_v27 }
 0x2ae   :  { %v428_v8 = vadd.f32 %v427_v26, %v426_v4  ;;  %v492_v31 = vadd.f32 %v491_v28, %v490_v5  ;;  %v541_v18 = vpop.permute.xlu1 %540  ;;  %v537_v32 = vpop.permute.xlu0 %536 }
 0x2af   :  { %v545_v12 = vsel %vm292_vm6, %v541_v18, %v533_v15  ;;  %v544_v6 = vsel %vm292_vm6, %v537_v32, %v529_v23 }
 0x2b0   :  { %v838_v7 = vsel %vm837_vm8, %v360_v30, %v428_v8  ;;  %v493_v33 = vrot.slane %v492_v31, 2  ;;  %v557_v34 = vmul.f32 %v1607_v42, %v545_v12  ;;  %v556_v35 = vmul.f32 %v1609_v43, %v544_v6 }
 0x2b2   :  { %v494_v39 = vadd.f32 %v493_v33, %v492_v31  ;;  %v558_v44 = vadd.f32 %v557_v34, %v556_v35  ;;  %v789_v45 = vpop.permute.xlu1 %788  ;;  %v785_v16 = vpop.permute.xlu0 %784 }
 0x2b4   :  { %v495_v20 = vrot.slane %v494_v39, 1  ;;  %v559_v46 = vrot.slane %v558_v44, 4 }
 0x2b6   :  { %v496_v14 = vadd.f32 %v495_v20, %v494_v39  ;;  %v560_v48 = vadd.f32 %v559_v46, %v558_v44  ;;  %v797_v9 = vpop.permute.xlu1 %796  ;;  %v793_v24 = vpop.permute.xlu0 %792 }
 0x2b7   :  { %v815_v49 = vsel %vm292_vm6, %v797_v9, %v789_v45  ;;  %v814_v50 = vsel %vm292_vm6, %v793_v24, %v785_v16  ;;  %v1134_v20 = vpop.eup %1133 }
 0x2b8   :  { %v840_v42 = vsel %vm839_vm9, %v838_v7, %v496_v14  ;;  %v561_v51 = vrot.slane %v560_v48, 2  ;;  %v825_v43 = vmul.f32 %v1419_v22, %v815_v49  ;;  %v824_v52 = vmul.f32 %v1419_v22, %v814_v50 }
 0x2b9   :  { %v860_v50 = vadd.f32 1.0, %v1134_v20 }
 0x2ba   :  { %v562_v53 = vadd.f32 %v561_v51, %v560_v48  ;;  %v601_v54 = vpop.permute.xlu1 %600  ;;  %v597_v55 = vpop.permute.xlu0 %596  ;;  %v827_v56 = vadd.f32 %v825_v43, %v1652_v41  ;;  %v826_v21 = vadd.f32 %v824_v52, %v1655_v11 }
 0x2bb   :  { %1135 = vrcp.f32 %v860_v50 }
 0x2bc   :  { %v563_v60 = vrot.slane %v562_v53, 1 }
 0x2be   :  { %v564_v57 = vadd.f32 %v563_v60, %v562_v53  ;;  %v609_v61 = vpop.permute.xlu1 %608  ;;  %v605_v17 = vpop.permute.xlu0 %604 }
 0x2bf   :  { %v613_v62 = vsel %vm292_vm6, %v609_v61, %v601_v54  ;;  %v612_v63 = vsel %vm292_vm6, %v605_v17, %v597_v55 }
 0x2c0   :  { %v842_v0 = vsel %vm841_vm10, %v840_v42, %v564_v57  ;;  %v625_v22 = vmul.f32 %v1623_v58, %v613_v62  ;;  %v624_v29 = vmul.f32 %v1625_v59, %v612_v63 }
 0x2c2   :  { %v626_v1 = vadd.f32 %v625_v22, %v624_v29  ;;  %v669_v41 = vpop.permute.xlu1 %668  ;;  %v665_v25 = vpop.permute.xlu0 %664  ;;  %v855_v22 = vmul.f32 %v964_v36, %v1343_v38 }
 0x2c4   :  { %v627_v11 = vrot.slane %v626_v1, 4 }
 0x2c6   :  { %v628_v47 = vadd.f32 %v627_v11, %v626_v1  ;;  %v677_v3 = vpop.permute.xlu1 %676  ;;  %v673_v2 = vpop.permute.xlu0 %672 }
 0x2c7   :  { %v681_v4 = vsel %vm292_vm6, %v677_v3, %v669_v41  ;;  %v680_v5 = vsel %vm292_vm6, %v673_v2, %v665_v25 }
 0x2c8   :  { %v629_v15 = vrot.slane %v628_v47, 2  ;;  %v693_v58 = vmul.f32 %v1635_v13, %v681_v4  ;;  %v692_v59 = vmul.f32 %v1637_v10, %v680_v5 }
 0x2ca   :  { %v630_v23 = vadd.f32 %v629_v15, %v628_v47  ;;  %v694_v26 = vadd.f32 %v693_v58, %v692_v59  ;;  %v737_v28 = vpop.permute.xlu1 %736  ;;  %v733_v30 = vpop.permute.xlu0 %732 }
 0x2cc   :  { %v631_v8 = vrot.slane %v630_v23, 1  ;;  %v695_v31 = vrot.slane %v694_v26, 4 }
 0x2ce   :  { %v632_v18 = vadd.f32 %v631_v8, %v630_v23  ;;  %v696_v32 = vadd.f32 %v695_v31, %v694_v26  ;;  %v745_v12 = vpop.permute.xlu1 %744  ;;  %v741_v6 = vpop.permute.xlu0 %740 }
 0x2cf   :  { %v749_v7 = vsel %vm292_vm6, %v745_v12, %v737_v28  ;;  %v748_v13 = vsel %vm292_vm6, %v741_v6, %v733_v30 }
 0x2d0   :  { %v844_v33 = vsel %vm843_vm11, %v842_v0, %v632_v18  ;;  %v697_v10 = vrot.slane %v696_v32, 2  ;;  %v761_v34 = vmul.f32 %v1647_v37, %v749_v7  ;;  %v760_v35 = vmul.f32 %v1649_v40, %v748_v13 }
 0x2d2   :  { %v698_v39 = vadd.f32 %v697_v10, %v696_v32  ;;  %v762_v44 = vadd.f32 %v761_v34, %v760_v35  ;;  %v805_v45 = vpop.permute.xlu1 %804  ;;  %v801_v16 = vpop.permute.xlu0 %800 }
 0x2d4   :  { %v699_v46 = vrot.slane %v698_v39, 1  ;;  %v763_v14 = vrot.slane %v762_v44, 4 }
 0x2d6   :  { %v700_v48 = vadd.f32 %v699_v46, %v698_v39  ;;  %v764_v9 = vadd.f32 %v763_v14, %v762_v44  ;;  %v813_v24 = vpop.permute.xlu1 %812  ;;  %v809_v49 = vpop.permute.xlu0 %808 }
 0x2d7   :  { %v817_v42 = vsel %vm292_vm6, %v813_v24, %v805_v45  ;;  %v816_v37 = vsel %vm292_vm6, %v809_v49, %v801_v16 }
 0x2d8   :  { %v765_v40 = vrot.slane %v764_v9, 2  ;;  %v829_v51 = vmul.f32 %v827_v56, %v817_v42  ;;  %v828_v43 = vmul.f32 %v826_v21, %v816_v37  ;;  %v846_v52 = vsel %vm845_vm12, %v844_v33, %v700_v48  ;;  %v1136_v56 = vpop.eup %1135 }
 0x2d9   :  { %v863_v1 = vmul.f32 %v1136_v56, %v1331_v19 }
 0x2da   :  { %v766_v53 = vadd.f32 %v765_v40, %v764_v9  ;;  %v830_v54 = vadd.f32 %v829_v51, %v828_v43 }
 0x2dc   :  { %v767_v55 = vrot.slane %v766_v53, 1  ;;  %v831_v60 = vrot.slane %v830_v54, 4 }
 0x2de   :  { %v768_v57 = vadd.f32 %v767_v55, %v766_v53  ;;  %v832_v61 = vadd.f32 %v831_v60, %v830_v54 }
 0x2e0   :  { %v833_v17 = vrot.slane %v832_v61, 2  ;;  %v848_v62 = vsel %vm847_vm13, %v846_v52, %v768_v57 }
 0x2e2   :  { %v834_v63 = vadd.f32 %v833_v17, %v832_v61 }
 0x2e4   :  { %v835_v0 = vrot.slane %v834_v63, 1 }
 0x2e6   :  { %v836_v21 = vadd.f32 %v835_v0, %v834_v63 }
 0x2e8   :  { %v850_v29 = vsel %vm849_vm14, %v848_v62, %v836_v21 }
 0x2e9   :  { %v856_v41 = vadd.f32 %v855_v22, %v850_v29 }
 0x2eb   :  { %v864_v25 = vmul.f32 %v863_v1, %v856_v41 }
 0x2ed   :  { %1016 = vmatmul.mubr.f32.vlgmr.msra.gmra.mrb[2].mxu0 %v864_v25 }
 0x3c0   :  { %v947_v11 = vpop.f32.mrb[2].mxu0 }
 0x3c1   :  { %951 = vst.msk [vmem:[%s1726_s5] sm:$0xff] %vm42_vm0, %v947_v11  ;;  %v1017_v27 = vpop.f32.mrb[3].mxu0 }

</bundles_post_ra>
